<compile_context>
chip_gen: v5e
topology: v5e:2x2
jax: 0.10.0
libtpu: 0.0.40
codegen_flags: <defaults>
</compile_context>

<pallas_src>
import functools

import numpy as np

import jax
import jax.numpy as jnp
from jax import lax
from jax.experimental import pallas as pl
from jax.experimental.pallas import tpu as pltpu

_SQRT_HALF = 0.7071067811865476


def _layernorm_f32(v, gamma, beta, eps=1e-5):
    mu = jnp.mean(v, axis=-1, keepdims=True)
    var = jnp.mean(jnp.square(v - mu), axis=-1, keepdims=True)
    return (v - mu) * lax.rsqrt(var + eps) * gamma + beta


def _erf_f32(v):
    # Abramowitz & Stegun 7.1.26 rational approximation (|err| < 1.5e-7),
    # built from VPU/EUP-safe primitives only (abs/mul/add/div/exp/select).
    a1, a2, a3, a4, a5 = (0.254829592, -0.284496736, 1.421413741,
                          -1.453152027, 1.061405429)
    p = 0.3275911
    a = jnp.abs(v)
    t = 1.0 / (1.0 + p * a)
    poly = ((((a5 * t + a4) * t + a3) * t + a2) * t + a1) * t
    y = 1.0 - poly * jnp.exp(-a * a)
    return jnp.where(v >= 0.0, y, -y)


def _gelu_exact(v):
    # torch.nn.GELU default == exact erf formulation.
    return 0.5 * v * (1.0 + _erf_f32(v * _SQRT_HALF))


def _block_kernel(x_ref, g1_ref, b1_ref, wq_ref, wk_ref, wv_ref,
                  wproj_ref, bproj_ref, g2_ref, b2_ref,
                  w1t_ref, bfc1_ref, w2_ref, bfc2_ref, o_ref,
                  *, num_heads, head_dim, dim, hidden, mlp_chunk, kv_tile,
                  approx_recip):
    cdt = wq_ref.dtype                       # MXU operand dtype (bf16 or f32)
    n = x_ref.shape[1]

    x = x_ref[0].astype(jnp.float32)         # (N, D) residual stream in f32

    # ---- norm1 + attention projections --------------------------------------
    ln1 = _layernorm_f32(x, g1_ref[0].astype(jnp.float32),
                         b1_ref[0].astype(jnp.float32))
    ln1_c = ln1.astype(cdt)

    # head_dim**-0.5 is already folded into wq host-side.
    q = jnp.dot(ln1_c, wq_ref[...], preferred_element_type=jnp.float32)
    k = jnp.dot(ln1_c, wk_ref[...], preferred_element_type=jnp.float32)
    v = jnp.dot(ln1_c, wv_ref[...], preferred_element_type=jnp.float32)

    # (N, D) -> (H, N, hd): head-major so both attention contractions are a
    # single head-batched dot_general each.
    # TODO(synk): producing q/k/v directly head-major via (H, D, hd) weights
    # needs a rank-2 x rank-3 dot_general, which Mosaic does not batch; keep
    # the explicit relayout.
    qh = q.astype(cdt).reshape(n, num_heads, head_dim).swapaxes(0, 1)
    kh = k.astype(cdt).reshape(n, num_heads, head_dim).swapaxes(0, 1)
    vh = v.astype(cdt).reshape(n, num_heads, head_dim).swapaxes(0, 1)

    # ---- flash-style online softmax over KV tiles ---------------------------
    m_i = jnp.full((num_heads, n, 1), -jnp.inf, jnp.float32)
    l_i = jnp.zeros((num_heads, n, 1), jnp.float32)
    acc = jnp.zeros((num_heads, n, head_dim), jnp.float32)

    tkv = min(kv_tile, n)
    for start in range(0, n, tkv):           # static trip count; tail handled
        stop = min(start + tkv, n)
        ks = kh[:, start:stop, :]
        vs = vh[:, start:stop, :]
        s = jnp.einsum('hqd,hkd->hqk', qh, ks,
                       preferred_element_type=jnp.float32)       # (H, N, tkv)
        m_new = jnp.maximum(m_i, jnp.max(s, axis=-1, keepdims=True))
        alpha = jnp.exp(m_i - m_new)
        p = jnp.exp(s - m_new)
        l_i = alpha * l_i + jnp.sum(p, axis=-1, keepdims=True)
        acc = alpha * acc + jnp.einsum('hqk,hkd->hqd', p.astype(cdt), vs,
                                       preferred_element_type=jnp.float32)
        m_i = m_new

    # Normalize AFTER the PV matmul (H*N*hd multiplies, not H*N*N).
    o = acc * pl.reciprocal(l_i, approx=approx_recip)             # (H, N, hd)

    attn = o.astype(cdt).swapaxes(0, 1).reshape(n, dim)           # (N, D)
    attn = (jnp.dot(attn, wproj_ref[...], preferred_element_type=jnp.float32)
            + bproj_ref[0].astype(jnp.float32))

    x1 = x + attn                                                 # residual 1

    # ---- norm2 + MLP (hidden dim chunked via fori_loop) ----------------------
    ln2 = _layernorm_f32(x1, g2_ref[0].astype(jnp.float32),
                         b2_ref[0].astype(jnp.float32))
    ln2_c = ln2.astype(cdt)

    n_chunks = hidden // mlp_chunk           # mlp_chunk chosen to divide hidden

    def mlp_body(ci, y):
        row0 = pl.multiple_of(ci * mlp_chunk, mlp_chunk)
        w1c = w1t_ref[pl.ds(row0, mlp_chunk), :]                  # (chunk, D)
        b1c = bfc1_ref[ci]                                        # (chunk,)
        # contract the shared D axis (A @ W1c^T): h is (N, chunk)
        h = lax.dot_general(ln2_c, w1c, (((1,), (1,)), ((), ())),
                            preferred_element_type=jnp.float32)
        h = _gelu_exact(h + b1c.astype(jnp.float32)[None, :])
        w2c = w2_ref[pl.ds(row0, mlp_chunk), :]                   # (chunk, D)
        return y + jnp.dot(h.astype(cdt), w2c,
                           preferred_element_type=jnp.float32)

    y = lax.fori_loop(0, n_chunks, mlp_body, x1)
    y = y + bfc2_ref[0].astype(jnp.float32)

    o_ref[0] = y.astype(o_ref.dtype)                              # residual 2


# ---------------------------------------------------------------------------
# host-side plumbing
# ---------------------------------------------------------------------------
@functools.lru_cache(maxsize=None)
def _single_buffer_weights_supported():
    """One-time capability probe for pl.Buffered(1) on grid-invariant inputs."""
    try:
        def probe_kernel(w_ref, o_ref):
            o_ref[...] = w_ref[...] + 1.0

        fn = pl.pallas_call(
            probe_kernel,
            out_shape=jax.ShapeDtypeStruct((8, 128), jnp.float32),
            grid=(2,),
            in_specs=[pl.BlockSpec((8, 128), lambda i: (0, 0),
                                   pipeline_mode=pl.Buffered(1))],
            out_specs=pl.BlockSpec((8, 128), lambda i: (0, 0)),
        )
        jax.jit(fn).lower(jax.ShapeDtypeStruct((8, 128), jnp.float32)).compile()
        return True
    except Exception:  # noqa: BLE001 - capability probe only, never on real path
        return False


def _vmem_cap_bytes():
    try:
        kind = jax.devices()[0].device_kind.lower()
    except Exception:  # noqa: BLE001 - no accelerator visible; conservative cap
        return 64 * 2 ** 20
    if "v7" in kind or "7x" in kind:
        return 56 * 2 ** 20          # v7x: 64 MiB physical per TC, leave headroom
    if "v5" in kind or "v6" in kind:
        return 100 * 2 ** 20         # v5e/v6e: 128 MiB physical
    return 64 * 2 ** 20


def _vmem_limit_bytes(n, dim, hidden, num_heads, mlp_chunk, kv_tile,
                      x_item, w_item, single_buf, cap):
    wbuf = 1 if single_buf else 2
    head_dim = dim // num_heads
    kv = min(kv_tile, n)
    io_tiles = 2 * 2 * n * dim * x_item                           # x + out, 2-buf
    weights = wbuf * (w_item * (4 * dim * dim + 2 * dim * hidden)
                      + 4 * (6 * dim + hidden))                   # f32 norms/biases
    acts = 4 * (8 * n * dim                                       # f32 residual/LN/qkv
                + 3 * num_heads * n * kv                          # score/prob tiles
                + num_heads * n * head_dim                        # flash accumulator
                + 2 * n * mlp_chunk)                              # fc1 activations
    need = io_tiles + weights + acts
    return int(min(cap, max(32 * 2 ** 20, int(1.5 * need))))


def _choose_mlp_chunk(hidden, requested):
    c = min(requested, hidden)
    if hidden % c == 0:
        return c
    for cand in range(c, 0, -1):               # prefer lane-aligned divisors
        if hidden % cand == 0 and cand % 128 == 0:
            return cand
    for cand in range(c, 0, -1):
        if hidden % cand == 0:
            return cand
    return hidden


@functools.lru_cache(maxsize=None)
def _get_block_fn(batch, n, dim, hidden, num_heads, x_dtype, compute_dtype,
                  mlp_chunk, kv_tile, single_buf):
    head_dim = dim // num_heads
    n_chunks = hidden // mlp_chunk
    approx_recip = compute_dtype == np.dtype(jnp.bfloat16)

    kernel = functools.partial(
        _block_kernel, num_heads=num_heads, head_dim=head_dim, dim=dim,
        hidden=hidden, mlp_chunk=mlp_chunk, kv_tile=kv_tile,
        approx_recip=approx_recip)

    def inv_spec(shape):
        index_map = lambda b, _shape=shape: (0,) * len(_shape)
        if single_buf:   # grid-invariant weights: one VMEM buffer suffices
            return pl.BlockSpec(shape, index_map, pipeline_mode=pl.Buffered(1))
        return pl.BlockSpec(shape, index_map)

    in_specs = [
        pl.BlockSpec((1, n, dim), lambda b: (b, 0, 0)),           # x
        inv_spec((1, dim)), inv_spec((1, dim)),                   # norm1 g / b
        inv_spec((dim, dim)), inv_spec((dim, dim)), inv_spec((dim, dim)),  # wq wk wv
        inv_spec((dim, dim)), inv_spec((1, dim)),                 # wproj, bproj
        inv_spec((1, dim)), inv_spec((1, dim)),                   # norm2 g / b
        inv_spec((hidden, dim)), inv_spec((n_chunks, mlp_chunk)),  # fc1 w^T / bias
        inv_spec((hidden, dim)), inv_spec((1, dim)),              # fc2 w / bias
    ]

    vmem_limit = _vmem_limit_bytes(
        n, dim, hidden, num_heads, mlp_chunk, kv_tile,
        np.dtype(x_dtype).itemsize, np.dtype(compute_dtype).itemsize,
        single_buf, _vmem_cap_bytes())

    call = pl.pallas_call(
        kernel,
        out_shape=jax.ShapeDtypeStruct((batch, n, dim), x_dtype),
        grid=(batch,),
        in_specs=in_specs,
        out_specs=pl.BlockSpec((1, n, dim), lambda b: (b, 0, 0)),
        compiler_params=pltpu.CompilerParams(
            dimension_semantics=("parallel",),
            vmem_limit_bytes=vmem_limit),
    )

    def fn(x, params):
        cast = lambda w: w.astype(compute_dtype)
        scale = head_dim ** -0.5
        wq = cast(params["wq"] * scale)        # q scale folded into the weight
        w1t = cast(params["w1"].T)             # (hidden, D): chunk on sublanes
        bfc1c = params["bfc1"].reshape(n_chunks, mlp_chunk)
        return call(x,
                    params["g1"], params["b1"],
                    wq, cast(params["wk"]), cast(params["wv"]),
                    cast(params["wproj"]), params["bproj"],
                    params["g2"], params["b2"],
                    w1t, bfc1c,
                    cast(params["w2"]), params["bfc2"])

    return jax.jit(fn)


def block_forward(x, params, *, num_heads, compute_dtype=jnp.bfloat16,
                  mlp_chunk=1024, kv_tile=512):
    """x: (B, N, D).  params: dict of f32 weights (see init_params)."""
    B, N, D = x.shape
    assert D % num_heads == 0
    hidden = params["w1"].shape[1]
    chunk = _choose_mlp_chunk(hidden, mlp_chunk)
    fn = _get_block_fn(B, N, D, hidden, num_heads,
                       np.dtype(x.dtype), np.dtype(compute_dtype),
                       chunk, max(1, min(kv_tile, N)),
                       _single_buffer_weights_supported())
    return fn(x, params)   # no host sync here; caller decides when to block


# ---------------------------------------------------------------------------
# pure-JAX reference (mirrors the PyTorch forward) for correctness checks
# ---------------------------------------------------------------------------
def block_reference(x, params, *, num_heads):
    B, N, D = x.shape
    hd = D // num_heads

    def ln(v, g, b):
        mu = jnp.mean(v, axis=-1, keepdims=True)
        var = jnp.mean((v - mu) ** 2, axis=-1, keepdims=True)
        return (v - mu) / jnp.sqrt(var + 1e-5) * g + b

    ln1 = ln(x, params["g1"][0], params["b1"][0])
    q = ln1 @ params["wq"]
    k = ln1 @ params["wk"]
    v = ln1 @ params["wv"]
    q = q.reshape(B, N, num_heads, hd).transpose(0, 2, 1, 3)
    k = k.reshape(B, N, num_heads, hd).transpose(0, 2, 1, 3)
    v = v.reshape(B, N, num_heads, hd).transpose(0, 2, 1, 3)
    s = jnp.einsum("bhqd,bhkd->bhqk", q, k) * (hd ** -0.5)
    p = jax.nn.softmax(s, axis=-1)
    attn = jnp.einsum("bhqk,bhkd->bhqd", p, v).transpose(0, 2, 1, 3).reshape(B, N, D)
    attn = attn @ params["wproj"] + params["bproj"][0]
    x1 = x + attn
    ln2 = ln(x1, params["g2"][0], params["b2"][0])
    h = jax.nn.gelu(ln2 @ params["w1"] + params["bfc1"][0], approximate=False)
    h = h @ params["w2"] + params["bfc2"][0]
    return x1 + h


def init_params(key, dim, num_heads, mlp_ratio=4.0):
    hidden = int(dim * mlp_ratio)
    ks = jax.random.split(key, 8)
    s = 0.02
    return dict(
        g1=jnp.ones((1, dim), jnp.float32),
        b1=jnp.zeros((1, dim), jnp.float32),
        wq=s * jax.random.normal(ks[0], (dim, dim), jnp.float32),
        wk=s * jax.random.normal(ks[1], (dim, dim), jnp.float32),
        wv=s * jax.random.normal(ks[2], (dim, dim), jnp.float32),
        wproj=s * jax.random.normal(ks[3], (dim, dim), jnp.float32),
        bproj=s * jax.random.normal(ks[4], (1, dim), jnp.float32),
        g2=jnp.ones((1, dim), jnp.float32),
        b2=jnp.zeros((1, dim), jnp.float32),
        w1=s * jax.random.normal(ks[5], (dim, hidden), jnp.float32),
        bfc1=s * jax.random.normal(ks[6], (1, hidden), jnp.float32),
        w2=s * jax.random.normal(ks[7], (hidden, dim), jnp.float32),
        bfc2=jnp.zeros((1, dim), jnp.float32),
    )


if __name__ == "__main__":
    key = jax.random.PRNGKey(0)

    # --- small demo shapes (single KV tile, single MLP chunk) ----------------
    B, N, D, H = 2, 8, 32, 4                       # head_dim = 8
    kx, kp, kx2, kp2 = jax.random.split(key, 4)
    x = jax.random.normal(kx, (B, N, D), jnp.float32)
    params = init_params(kp, D, H, mlp_ratio=4.0)
    ref = block_reference(x, params, num_heads=H)

    out_f32 = jax.block_until_ready(
        block_forward(x, params, num_heads=H, compute_dtype=jnp.float32))
    assert out_f32.shape == (B, N, D)
    assert jnp.allclose(out_f32, ref, atol=2e-3, rtol=2e-3), \
        f"f32 max abs err {jnp.max(jnp.abs(out_f32 - ref))}"

    out_bf16 = jax.block_until_ready(
        block_forward(x, params, num_heads=H, compute_dtype=jnp.bfloat16))
    assert out_bf16.shape == (B, N, D)
    assert jnp.allclose(out_bf16, ref, atol=3e-2, rtol=3e-2), \
        f"bf16 max abs err {jnp.max(jnp.abs(out_bf16 - ref))}"

    # --- slightly larger shapes forcing multi-KV-tile + multi-MLP-chunk paths -
    B2, N2, D2, H2 = 2, 128, 128, 4                # head_dim = 32, hidden = 512
    x2 = jax.random.normal(kx2, (B2, N2, D2), jnp.float32)
    params2 = init_params(kp2, D2, H2, mlp_ratio=4.0)
    ref2 = block_reference(x2, params2, num_heads=H2)
    out2 = jax.block_until_ready(
        block_forward(x2, params2, num_heads=H2, compute_dtype=jnp.bfloat16,
                      mlp_chunk=128, kv_tile=64))
    assert out2.shape == (B2, N2, D2)
    assert jnp.allclose(out2, ref2, atol=3e-2, rtol=3e-2), \
        f"tiled bf16 max abs err {jnp.max(jnp.abs(out2 - ref2))}"

    print("KERNEL_OK")
</pallas_src>

<mosaic_0001>
module attributes {stable_mosaic.version = 11 : i64} {
  func.func @_block_kernel(%arg0: i32, %arg1: memref<1x8x32xf32, #tpu.memory_space<vmem>>, %arg2: memref<1x32xf32, #tpu.memory_space<vmem>>, %arg3: memref<1x32xf32, #tpu.memory_space<vmem>>, %arg4: memref<32x32xf32, #tpu.memory_space<vmem>>, %arg5: memref<32x32xf32, #tpu.memory_space<vmem>>, %arg6: memref<32x32xf32, #tpu.memory_space<vmem>>, %arg7: memref<32x32xf32, #tpu.memory_space<vmem>>, %arg8: memref<1x32xf32, #tpu.memory_space<vmem>>, %arg9: memref<1x32xf32, #tpu.memory_space<vmem>>, %arg10: memref<1x32xf32, #tpu.memory_space<vmem>>, %arg11: memref<128x32xf32, #tpu.memory_space<vmem>>, %arg12: memref<1x128xf32, #tpu.memory_space<vmem>>, %arg13: memref<128x32xf32, #tpu.memory_space<vmem>>, %arg14: memref<1x32xf32, #tpu.memory_space<vmem>>, %arg15: memref<1x8x32xf32, #tpu.memory_space<vmem>>) attributes {dimension_semantics = [#tpu.dimension_semantics<parallel>], iteration_bounds = array<i64: 2>, scalar_prefetch = 0 : i64, scratch_operands = 0 : i64, tpu.core_type = #tpu.core_type<tc>, window_params = [{transform_indices = @transform_0, window_bounds = array<i64: 1, 8, 32>}, {pipeline_mode = #tpu.pipeline_mode<synchronous>, transform_indices = @transform_1, window_bounds = array<i64: 1, 32>}, {pipeline_mode = #tpu.pipeline_mode<synchronous>, transform_indices = @transform_2, window_bounds = array<i64: 1, 32>}, {pipeline_mode = #tpu.pipeline_mode<synchronous>, transform_indices = @transform_3, window_bounds = array<i64: 32, 32>}, {pipeline_mode = #tpu.pipeline_mode<synchronous>, transform_indices = @transform_4, window_bounds = array<i64: 32, 32>}, {pipeline_mode = #tpu.pipeline_mode<synchronous>, transform_indices = @transform_5, window_bounds = array<i64: 32, 32>}, {pipeline_mode = #tpu.pipeline_mode<synchronous>, transform_indices = @transform_6, window_bounds = array<i64: 32, 32>}, {pipeline_mode = #tpu.pipeline_mode<synchronous>, transform_indices = @transform_7, window_bounds = array<i64: 1, 32>}, {pipeline_mode = #tpu.pipeline_mode<synchronous>, transform_indices = @transform_8, window_bounds = array<i64: 1, 32>}, {pipeline_mode = #tpu.pipeline_mode<synchronous>, transform_indices = @transform_9, window_bounds = array<i64: 1, 32>}, {pipeline_mode = #tpu.pipeline_mode<synchronous>, transform_indices = @transform_10, window_bounds = array<i64: 128, 32>}, {pipeline_mode = #tpu.pipeline_mode<synchronous>, transform_indices = @transform_11, window_bounds = array<i64: 1, 128>}, {pipeline_mode = #tpu.pipeline_mode<synchronous>, transform_indices = @transform_12, window_bounds = array<i64: 128, 32>}, {pipeline_mode = #tpu.pipeline_mode<synchronous>, transform_indices = @transform_13, window_bounds = array<i64: 1, 32>}, {transform_indices = @transform_14, window_bounds = array<i64: 1, 8, 32>}]} {
    %c0 = arith.constant 0 : index
    %c0_0 = arith.constant 0 : index
    %c0_1 = arith.constant 0 : index
    %0 = vector.load %arg1[%c0, %c0_0, %c0_1] : memref<1x8x32xf32, #tpu.memory_space<vmem>>, vector<1x8x32xf32>
    %1 = vector.shape_cast %0 : vector<1x8x32xf32> to vector<8x32xf32>
    %c0_2 = arith.constant 0 : index
    %c0_3 = arith.constant 0 : index
    %2 = vector.load %arg2[%c0_2, %c0_3] : memref<1x32xf32, #tpu.memory_space<vmem>>, vector<1x32xf32>
    %3 = vector.shape_cast %2 : vector<1x32xf32> to vector<32xf32>
    %c0_4 = arith.constant 0 : index
    %c0_5 = arith.constant 0 : index
    %4 = vector.load %arg3[%c0_4, %c0_5] : memref<1x32xf32, #tpu.memory_space<vmem>>, vector<1x32xf32>
    %5 = vector.shape_cast %4 : vector<1x32xf32> to vector<32xf32>
    %cst = arith.constant dense<0.000000e+00> : vector<8xf32>
    %6 = vector.multi_reduction <add>, %1, %cst [1] : vector<8x32xf32> to vector<8xf32>
    %7 = vector.shape_cast %6 : vector<8xf32> to vector<8x1xf32>
    %cst_6 = arith.constant 3.200000e+01 : f32
    %8 = vector.broadcast %cst_6 : f32 to vector<8x1xf32>
    %9 = arith.divf %7, %8 : vector<8x1xf32>
    %10 = vector.broadcast %9 : vector<8x1xf32> to vector<8x32xf32>
    %11 = arith.subf %1, %10 : vector<8x32xf32>
    %12 = arith.mulf %11, %11 : vector<8x32xf32>
    %cst_7 = arith.constant dense<0.000000e+00> : vector<8xf32>
    %13 = vector.multi_reduction <add>, %12, %cst_7 [1] : vector<8x32xf32> to vector<8xf32>
    %14 = vector.shape_cast %13 : vector<8xf32> to vector<8x1xf32>
    %cst_8 = arith.constant 3.200000e+01 : f32
    %15 = vector.broadcast %cst_8 : f32 to vector<8x1xf32>
    %16 = arith.divf %14, %15 : vector<8x1xf32>
    %17 = vector.broadcast %9 : vector<8x1xf32> to vector<8x32xf32>
    %18 = arith.subf %1, %17 : vector<8x32xf32>
    %cst_9 = arith.constant 9.99999974E-6 : f32
    %19 = vector.broadcast %cst_9 : f32 to vector<8x1xf32>
    %20 = arith.addf %16, %19 : vector<8x1xf32>
    %21 = math.rsqrt %20 : vector<8x1xf32>
    %22 = vector.broadcast %21 : vector<8x1xf32> to vector<8x32xf32>
    %23 = arith.mulf %18, %22 : vector<8x32xf32>
    %24 = vector.shape_cast %3 : vector<32xf32> to vector<1x32xf32>
    %25 = vector.broadcast %24 : vector<1x32xf32> to vector<8x32xf32>
    %26 = arith.mulf %23, %25 : vector<8x32xf32>
    %27 = vector.shape_cast %5 : vector<32xf32> to vector<1x32xf32>
    %28 = vector.broadcast %27 : vector<1x32xf32> to vector<8x32xf32>
    %29 = arith.addf %26, %28 : vector<8x32xf32>
    %c0_10 = arith.constant 0 : index
    %c0_11 = arith.constant 0 : index
    %30 = vector.load %arg4[%c0_10, %c0_11] : memref<32x32xf32, #tpu.memory_space<vmem>>, vector<32x32xf32>
    %cst_12 = arith.constant dense<0.000000e+00> : vector<8x32xf32>
    %31 = tpu.matmul %29, %30, %cst_12 {dimension_numbers = #tpu.dot_dimension_numbers<[1], [0], [0], [1], [0, 0, 1, 1], [], []>} : vector<8x32xf32>, vector<32x32xf32>, vector<8x32xf32> -> vector<8x32xf32>
    %c0_13 = arith.constant 0 : index
    %c0_14 = arith.constant 0 : index
    %32 = vector.load %arg5[%c0_13, %c0_14] : memref<32x32xf32, #tpu.memory_space<vmem>>, vector<32x32xf32>
    %cst_15 = arith.constant dense<0.000000e+00> : vector<8x32xf32>
    %33 = tpu.matmul %29, %32, %cst_15 {dimension_numbers = #tpu.dot_dimension_numbers<[1], [0], [0], [1], [0, 0, 1, 1], [], []>} : vector<8x32xf32>, vector<32x32xf32>, vector<8x32xf32> -> vector<8x32xf32>
    %c0_16 = arith.constant 0 : index
    %c0_17 = arith.constant 0 : index
    %34 = vector.load %arg6[%c0_16, %c0_17] : memref<32x32xf32, #tpu.memory_space<vmem>>, vector<32x32xf32>
    %cst_18 = arith.constant dense<0.000000e+00> : vector<8x32xf32>
    %35 = tpu.matmul %29, %34, %cst_18 {dimension_numbers = #tpu.dot_dimension_numbers<[1], [0], [0], [1], [0, 0, 1, 1], [], []>} : vector<8x32xf32>, vector<32x32xf32>, vector<8x32xf32> -> vector<8x32xf32>
    %36 = vector.shape_cast %31 : vector<8x32xf32> to vector<8x4x8xf32>
    %37 = tpu.transpose %36, [1, 0, 2] : vector<8x4x8xf32> -> vector<4x8x8xf32>
    %38 = vector.shape_cast %33 : vector<8x32xf32> to vector<8x4x8xf32>
    %39 = tpu.transpose %38, [1, 0, 2] : vector<8x4x8xf32> -> vector<4x8x8xf32>
    %40 = vector.shape_cast %35 : vector<8x32xf32> to vector<8x4x8xf32>
    %41 = tpu.transpose %40, [1, 0, 2] : vector<8x4x8xf32> -> vector<4x8x8xf32>
    %cst_19 = arith.constant 0xFF800000 : f32
    %42 = vector.broadcast %cst_19 : f32 to vector<4x8x1xf32>
    %cst_20 = arith.constant 0.000000e+00 : f32
    %43 = vector.broadcast %cst_20 : f32 to vector<4x8x1xf32>
    %cst_21 = arith.constant 0.000000e+00 : f32
    %44 = vector.broadcast %cst_21 : f32 to vector<4x8x8xf32>
    "tpu.trace_start"() <{level = 10 : i32, message = "hqd,hkd->hqk"}> : () -> ()
    %cst_22 = arith.constant dense<0.000000e+00> : vector<4x8x8xf32>
    %45 = tpu.matmul %37, %39, %cst_22 {dimension_numbers = #tpu.dot_dimension_numbers<[2], [2], [1], [1], [0, 0, 0, 1, 1, 1], [0], [0]>} : vector<4x8x8xf32>, vector<4x8x8xf32>, vector<4x8x8xf32> -> vector<4x8x8xf32>
    "tpu.trace_stop"() : () -> ()
    %cst_23 = arith.constant dense<0xFF800000> : vector<4x8xf32>
    %46 = vector.multi_reduction <maximumf>, %45, %cst_23 [2] : vector<4x8x8xf32> to vector<4x8xf32>
    %47 = vector.shape_cast %46 : vector<4x8xf32> to vector<4x8x1xf32>
    %48 = arith.maximumf %42, %47 : vector<4x8x1xf32>
    %49 = arith.subf %42, %48 : vector<4x8x1xf32>
    %50 = math.exp %49 : vector<4x8x1xf32>
    %51 = vector.broadcast %48 : vector<4x8x1xf32> to vector<4x8x8xf32>
    %52 = arith.subf %45, %51 : vector<4x8x8xf32>
    %53 = math.exp %52 : vector<4x8x8xf32>
    %54 = arith.mulf %50, %43 : vector<4x8x1xf32>
    %cst_24 = arith.constant dense<0.000000e+00> : vector<4x8xf32>
    %55 = vector.multi_reduction <add>, %53, %cst_24 [2] : vector<4x8x8xf32> to vector<4x8xf32>
    %56 = vector.shape_cast %55 : vector<4x8xf32> to vector<4x8x1xf32>
    %57 = arith.addf %54, %56 : vector<4x8x1xf32>
    %58 = vector.broadcast %50 : vector<4x8x1xf32> to vector<4x8x8xf32>
    %59 = arith.mulf %58, %44 : vector<4x8x8xf32>
    "tpu.trace_start"() <{level = 10 : i32, message = "hqk,hkd->hqd"}> : () -> ()
    %cst_25 = arith.constant dense<0.000000e+00> : vector<4x8x8xf32>
    %60 = tpu.matmul %53, %41, %cst_25 {dimension_numbers = #tpu.dot_dimension_numbers<[2], [1], [1], [2], [0, 0, 0, 1, 1, 2], [0], [0]>} : vector<4x8x8xf32>, vector<4x8x8xf32>, vector<4x8x8xf32> -> vector<4x8x8xf32>
    "tpu.trace_stop"() : () -> ()
    %61 = arith.addf %59, %60 : vector<4x8x8xf32>
    %62 = tpu.reciprocal %57 : vector<4x8x1xf32> -> vector<4x8x1xf32>
    %63 = vector.broadcast %62 : vector<4x8x1xf32> to vector<4x8x8xf32>
    %64 = arith.mulf %61, %63 : vector<4x8x8xf32>
    %65 = tpu.transpose %64, [1, 0, 2] : vector<4x8x8xf32> -> vector<8x4x8xf32>
    %66 = vector.shape_cast %65 : vector<8x4x8xf32> to vector<8x32xf32>
    %c0_26 = arith.constant 0 : index
    %c0_27 = arith.constant 0 : index
    %67 = vector.load %arg7[%c0_26, %c0_27] : memref<32x32xf32, #tpu.memory_space<vmem>>, vector<32x32xf32>
    %cst_28 = arith.constant dense<0.000000e+00> : vector<8x32xf32>
    %68 = tpu.matmul %66, %67, %cst_28 {dimension_numbers = #tpu.dot_dimension_numbers<[1], [0], [0], [1], [0, 0, 1, 1], [], []>} : vector<8x32xf32>, vector<32x32xf32>, vector<8x32xf32> -> vector<8x32xf32>
    %c0_29 = arith.constant 0 : index
    %c0_30 = arith.constant 0 : index
    %69 = vector.load %arg8[%c0_29, %c0_30] : memref<1x32xf32, #tpu.memory_space<vmem>>, vector<1x32xf32>
    %70 = vector.shape_cast %69 : vector<1x32xf32> to vector<32xf32>
    %71 = vector.shape_cast %70 : vector<32xf32> to vector<1x32xf32>
    %72 = vector.broadcast %71 : vector<1x32xf32> to vector<8x32xf32>
    %73 = arith.addf %68, %72 : vector<8x32xf32>
    %74 = arith.addf %1, %73 : vector<8x32xf32>
    %c0_31 = arith.constant 0 : index
    %c0_32 = arith.constant 0 : index
    %75 = vector.load %arg9[%c0_31, %c0_32] : memref<1x32xf32, #tpu.memory_space<vmem>>, vector<1x32xf32>
    %76 = vector.shape_cast %75 : vector<1x32xf32> to vector<32xf32>
    %c0_33 = arith.constant 0 : index
    %c0_34 = arith.constant 0 : index
    %77 = vector.load %arg10[%c0_33, %c0_34] : memref<1x32xf32, #tpu.memory_space<vmem>>, vector<1x32xf32>
    %78 = vector.shape_cast %77 : vector<1x32xf32> to vector<32xf32>
    %cst_35 = arith.constant dense<0.000000e+00> : vector<8xf32>
    %79 = vector.multi_reduction <add>, %74, %cst_35 [1] : vector<8x32xf32> to vector<8xf32>
    %80 = vector.shape_cast %79 : vector<8xf32> to vector<8x1xf32>
    %cst_36 = arith.constant 3.200000e+01 : f32
    %81 = vector.broadcast %cst_36 : f32 to vector<8x1xf32>
    %82 = arith.divf %80, %81 : vector<8x1xf32>
    %83 = vector.broadcast %82 : vector<8x1xf32> to vector<8x32xf32>
    %84 = arith.subf %74, %83 : vector<8x32xf32>
    %85 = arith.mulf %84, %84 : vector<8x32xf32>
    %cst_37 = arith.constant dense<0.000000e+00> : vector<8xf32>
    %86 = vector.multi_reduction <add>, %85, %cst_37 [1] : vector<8x32xf32> to vector<8xf32>
    %87 = vector.shape_cast %86 : vector<8xf32> to vector<8x1xf32>
    %cst_38 = arith.constant 3.200000e+01 : f32
    %88 = vector.broadcast %cst_38 : f32 to vector<8x1xf32>
    %89 = arith.divf %87, %88 : vector<8x1xf32>
    %90 = vector.broadcast %82 : vector<8x1xf32> to vector<8x32xf32>
    %91 = arith.subf %74, %90 : vector<8x32xf32>
    %cst_39 = arith.constant 9.99999974E-6 : f32
    %92 = vector.broadcast %cst_39 : f32 to vector<8x1xf32>
    %93 = arith.addf %89, %92 : vector<8x1xf32>
    %94 = math.rsqrt %93 : vector<8x1xf32>
    %95 = vector.broadcast %94 : vector<8x1xf32> to vector<8x32xf32>
    %96 = arith.mulf %91, %95 : vector<8x32xf32>
    %97 = vector.shape_cast %76 : vector<32xf32> to vector<1x32xf32>
    %98 = vector.broadcast %97 : vector<1x32xf32> to vector<8x32xf32>
    %99 = arith.mulf %96, %98 : vector<8x32xf32>
    %100 = vector.shape_cast %78 : vector<32xf32> to vector<1x32xf32>
    %101 = vector.broadcast %100 : vector<1x32xf32> to vector<8x32xf32>
    %102 = arith.addf %99, %101 : vector<8x32xf32>
    %c0_i32 = arith.constant 0 : i32
    %c128_i32 = arith.constant 128 : i32
    %103 = arith.muli %c0_i32, %c128_i32 : i32
    %104 = tpu.assume_multiple %103, 128 : i32
    %105 = arith.index_cast %104 : i32 to index
    %c0_40 = arith.constant 0 : index
    %106 = vector.load %arg11[%105, %c0_40] : memref<128x32xf32, #tpu.memory_space<vmem>>, vector<128x32xf32>
    %107 = arith.index_cast %c0_i32 : i32 to index
    %c0_41 = arith.constant 0 : index
    %108 = vector.load %arg12[%107, %c0_41] : memref<1x128xf32, #tpu.memory_space<vmem>>, vector<1x128xf32>
    %109 = vector.shape_cast %108 : vector<1x128xf32> to vector<128xf32>
    %cst_42 = arith.constant dense<0.000000e+00> : vector<8x128xf32>
    %110 = tpu.matmul %102, %106, %cst_42 {dimension_numbers = #tpu.dot_dimension_numbers<[1], [1], [0], [0], [0, 0, 1, 0], [], []>} : vector<8x32xf32>, vector<128x32xf32>, vector<8x128xf32> -> vector<8x128xf32>
    %111 = vector.shape_cast %109 : vector<128xf32> to vector<1x128xf32>
    %112 = vector.broadcast %111 : vector<1x128xf32> to vector<8x128xf32>
    %113 = arith.addf %110, %112 : vector<8x128xf32>
    %cst_43 = arith.constant 5.000000e-01 : f32
    %114 = vector.broadcast %cst_43 : f32 to vector<8x128xf32>
    %115 = arith.mulf %114, %113 : vector<8x128xf32>
    %cst_44 = arith.constant 0.707106769 : f32
    %116 = vector.broadcast %cst_44 : f32 to vector<8x128xf32>
    %117 = arith.mulf %113, %116 : vector<8x128xf32>
    %118 = math.absf %117 : vector<8x128xf32>
    %cst_45 = arith.constant 0.327591091 : f32
    %119 = vector.broadcast %cst_45 : f32 to vector<8x128xf32>
    %120 = arith.mulf %119, %118 : vector<8x128xf32>
    %cst_46 = arith.constant 1.000000e+00 : f32
    %121 = vector.broadcast %cst_46 : f32 to vector<8x128xf32>
    %122 = arith.addf %121, %120 : vector<8x128xf32>
    %cst_47 = arith.constant 1.000000e+00 : f32
    %123 = vector.broadcast %cst_47 : f32 to vector<8x128xf32>
    %124 = arith.divf %123, %122 : vector<8x128xf32>
    %cst_48 = arith.constant 1.06140542 : f32
    %125 = vector.broadcast %cst_48 : f32 to vector<8x128xf32>
    %126 = arith.mulf %125, %124 : vector<8x128xf32>
    %cst_49 = arith.constant -1.45315206 : f32
    %127 = vector.broadcast %cst_49 : f32 to vector<8x128xf32>
    %128 = arith.addf %126, %127 : vector<8x128xf32>
    %129 = arith.mulf %128, %124 : vector<8x128xf32>
    %cst_50 = arith.constant 1.42141378 : f32
    %130 = vector.broadcast %cst_50 : f32 to vector<8x128xf32>
    %131 = arith.addf %129, %130 : vector<8x128xf32>
    %132 = arith.mulf %131, %124 : vector<8x128xf32>
    %cst_51 = arith.constant -0.284496725 : f32
    %133 = vector.broadcast %cst_51 : f32 to vector<8x128xf32>
    %134 = arith.addf %132, %133 : vector<8x128xf32>
    %135 = arith.mulf %134, %124 : vector<8x128xf32>
    %cst_52 = arith.constant 0.254829586 : f32
    %136 = vector.broadcast %cst_52 : f32 to vector<8x128xf32>
    %137 = arith.addf %135, %136 : vector<8x128xf32>
    %138 = arith.mulf %137, %124 : vector<8x128xf32>
    %cst_53 = arith.constant 0.000000e+00 : f32
    %139 = vector.broadcast %cst_53 : f32 to vector<8x128xf32>
    %140 = arith.subf %139, %118 : vector<8x128xf32>
    %141 = arith.mulf %140, %118 : vector<8x128xf32>
    %142 = math.exp %141 : vector<8x128xf32>
    %143 = arith.mulf %138, %142 : vector<8x128xf32>
    %cst_54 = arith.constant 1.000000e+00 : f32
    %144 = vector.broadcast %cst_54 : f32 to vector<8x128xf32>
    %145 = arith.subf %144, %143 : vector<8x128xf32>
    %cst_55 = arith.constant 0.000000e+00 : f32
    %146 = vector.broadcast %cst_55 : f32 to vector<8x128xf32>
    %147 = arith.cmpf oge, %117, %146 : vector<8x128xf32>
    %cst_56 = arith.constant 0.000000e+00 : f32
    %148 = vector.broadcast %cst_56 : f32 to vector<8x128xf32>
    %149 = arith.subf %148, %145 : vector<8x128xf32>
    %150 = arith.select %147, %145, %149 : vector<8x128xi1>, vector<8x128xf32>
    %cst_57 = arith.constant 1.000000e+00 : f32
    %151 = vector.broadcast %cst_57 : f32 to vector<8x128xf32>
    %152 = arith.addf %151, %150 : vector<8x128xf32>
    %153 = arith.mulf %115, %152 : vector<8x128xf32>
    %154 = arith.index_cast %104 : i32 to index
    %c0_58 = arith.constant 0 : index
    %155 = vector.load %arg13[%154, %c0_58] : memref<128x32xf32, #tpu.memory_space<vmem>>, vector<128x32xf32>
    %cst_59 = arith.constant dense<0.000000e+00> : vector<8x32xf32>
    %156 = tpu.matmul %153, %155, %cst_59 {dimension_numbers = #tpu.dot_dimension_numbers<[1], [0], [0], [1], [0, 0, 1, 1], [], []>} : vector<8x128xf32>, vector<128x32xf32>, vector<8x32xf32> -> vector<8x32xf32>
    %157 = arith.addf %74, %156 : vector<8x32xf32>
    %c1_i32 = arith.constant 1 : i32
    %c0_60 = arith.constant 0 : index
    %c0_61 = arith.constant 0 : index
    %158 = vector.load %arg14[%c0_60, %c0_61] : memref<1x32xf32, #tpu.memory_space<vmem>>, vector<1x32xf32>
    %159 = vector.shape_cast %158 : vector<1x32xf32> to vector<32xf32>
    %160 = vector.shape_cast %159 : vector<32xf32> to vector<1x32xf32>
    %161 = vector.broadcast %160 : vector<1x32xf32> to vector<8x32xf32>
    %162 = arith.addf %157, %161 : vector<8x32xf32>
    %c0_62 = arith.constant 0 : index
    %c0_63 = arith.constant 0 : index
    %c0_64 = arith.constant 0 : index
    %163 = vector.load %arg15[%c0_62, %c0_63, %c0_64] : memref<1x8x32xf32, #tpu.memory_space<vmem>>, vector<1x8x32xf32>
    %164 = vector.shape_cast %163 : vector<1x8x32xf32> to vector<8x32xf32>
    %165 = vector.shape_cast %162 : vector<8x32xf32> to vector<1x8x32xf32>
    tpu.vector_store %arg15[%c0_62, %c0_63, %c0_64], %165 {strides = array<i32>} : memref<1x8x32xf32, #tpu.memory_space<vmem>>, vector<1x8x32xf32>,
    return
  }
  func.func @transform_0(%arg0: i32) -> (i32, i32, i32) {
    %c0_i32 = arith.constant 0 : i32
    %c0_i32_0 = arith.constant 0 : i32
    %c0_i32_1 = arith.constant 0 : i32
    return %arg0, %c0_i32, %c0_i32_0 : i32, i32, i32
  }
  func.func @transform_1(%arg0: i32) -> (i32, i32) {
    %c0_i32 = arith.constant 0 : i32
    %c0_i32_0 = arith.constant 0 : i32
    %c0_i32_1 = arith.constant 0 : i32
    return %c0_i32, %c0_i32_0 : i32, i32
  }
  func.func @transform_2(%arg0: i32) -> (i32, i32) {
    %c0_i32 = arith.constant 0 : i32
    %c0_i32_0 = arith.constant 0 : i32
    %c0_i32_1 = arith.constant 0 : i32
    return %c0_i32, %c0_i32_0 : i32, i32
  }
  func.func @transform_3(%arg0: i32) -> (i32, i32) {
    %c0_i32 = arith.constant 0 : i32
    %c0_i32_0 = arith.constant 0 : i32
    %c0_i32_1 = arith.constant 0 : i32
    return %c0_i32, %c0_i32_0 : i32, i32
  }
  func.func @transform_4(%arg0: i32) -> (i32, i32) {
    %c0_i32 = arith.constant 0 : i32
    %c0_i32_0 = arith.constant 0 : i32
    %c0_i32_1 = arith.constant 0 : i32
    return %c0_i32, %c0_i32_0 : i32, i32
  }
  func.func @transform_5(%arg0: i32) -> (i32, i32) {
    %c0_i32 = arith.constant 0 : i32
    %c0_i32_0 = arith.constant 0 : i32
    %c0_i32_1 = arith.constant 0 : i32
    return %c0_i32, %c0_i32_0 : i32, i32
  }
  func.func @transform_6(%arg0: i32) -> (i32, i32) {
    %c0_i32 = arith.constant 0 : i32
    %c0_i32_0 = arith.constant 0 : i32
    %c0_i32_1 = arith.constant 0 : i32
    return %c0_i32, %c0_i32_0 : i32, i32
  }
  func.func @transform_7(%arg0: i32) -> (i32, i32) {
    %c0_i32 = arith.constant 0 : i32
    %c0_i32_0 = arith.constant 0 : i32
    %c0_i32_1 = arith.constant 0 : i32
    return %c0_i32, %c0_i32_0 : i32, i32
  }
  func.func @transform_8(%arg0: i32) -> (i32, i32) {
    %c0_i32 = arith.constant 0 : i32
    %c0_i32_0 = arith.constant 0 : i32
    %c0_i32_1 = arith.constant 0 : i32
    return %c0_i32, %c0_i32_0 : i32, i32
  }
  func.func @transform_9(%arg0: i32) -> (i32, i32) {
    %c0_i32 = arith.constant 0 : i32
    %c0_i32_0 = arith.constant 0 : i32
    %c0_i32_1 = arith.constant 0 : i32
    return %c0_i32, %c0_i32_0 : i32, i32
  }
  func.func @transform_10(%arg0: i32) -> (i32, i32) {
    %c0_i32 = arith.constant 0 : i32
    %c0_i32_0 = arith.constant 0 : i32
    %c0_i32_1 = arith.constant 0 : i32
    return %c0_i32, %c0_i32_0 : i32, i32
  }
  func.func @transform_11(%arg0: i32) -> (i32, i32) {
    %c0_i32 = arith.constant 0 : i32
    %c0_i32_0 = arith.constant 0 : i32
    %c0_i32_1 = arith.constant 0 : i32
    return %c0_i32, %c0_i32_0 : i32, i32
  }
  func.func @transform_12(%arg0: i32) -> (i32, i32) {
    %c0_i32 = arith.constant 0 : i32
    %c0_i32_0 = arith.constant 0 : i32
    %c0_i32_1 = arith.constant 0 : i32
    return %c0_i32, %c0_i32_0 : i32, i32
  }
  func.func @transform_13(%arg0: i32) -> (i32, i32) {
    %c0_i32 = arith.constant 0 : i32
    %c0_i32_0 = arith.constant 0 : i32
    %c0_i32_1 = arith.constant 0 : i32
    return %c0_i32, %c0_i32_0 : i32, i32
  }
  func.func @transform_14(%arg0: i32) -> (i32, i32, i32) {
    %c0_i32 = arith.constant 0 : i32
    %c0_i32_0 = arith.constant 0 : i32
    %c0_i32_1 = arith.constant 0 : i32
    return %arg0, %c0_i32, %c0_i32_0 : i32, i32, i32
  }
}

</mosaic_0001>

<bundles_post_ra>
// kernel: fn.1
= control target key start
LH: loop header
LB: loop body
LE: loop exit
PB: predicated region body
PF: predicated region fallthrough
CT: control target
= control target key end

     0   :  { %s2513_s0 = inlined_call_operand.vmem [shape: f32[2,8,32], index: 0, kind: input, shape index: {}]   ;;  %s2514_s1 = inlined_call_operand.vmem [shape: f32[1,32], index: 1, kind: input, shape index: {}]   ;;  %s2515_s2 = inlined_call_operand.vmem [shape: f32[1,32], index: 2, kind: input, shape index: {}]   ;;  %s2516_s3 = inlined_call_operand.vmem [shape: f32[32,32], index: 3, kind: input, shape index: {}]   ;;  %s2517_s4 = inlined_call_operand.vmem [shape: f32[32,32], index: 4, kind: input, shape index: {}]   ;;  %s2518_s5 = inlined_call_operand.vmem [shape: f32[32,32], index: 5, kind: input, shape index: {}]   ;;  %s2519_s6 = inlined_call_operand.vmem [shape: f32[32,32], index: 6, kind: input, shape index: {}]   ;;  %s2520_s7 = inlined_call_operand.vmem [shape: f32[1,32], index: 7, kind: input, shape index: {}]   ;;  %s2521_s8 = inlined_call_operand.vmem [shape: f32[1,32], index: 8, kind: input, shape index: {}]   ;;  %s2522_s9 = inlined_call_operand.vmem [shape: f32[1,32], index: 9, kind: input, shape index: {}]   ;;  %s2523_s10 = inlined_call_operand.vmem [shape: f32[128,32], index: 10, kind: input, shape index: {}]   ;;  %s2524_s11 = inlined_call_operand.vmem [shape: f32[1,128], index: 11, kind: input, shape index: {}]   ;;  %s2525_s12 = inlined_call_operand.vmem [shape: f32[128,32], index: 12, kind: input, shape index: {}]   ;;  %s2526_s13 = inlined_call_operand.vmem [shape: f32[1,32], index: 13, kind: input, shape index: {}]   ;;  %s2527_s14 = inlined_call_operand.hbm [shape: f32[2,8,32], index: 14, kind: output, shape index: {}]  }
   0x1   :  { %2531 = sst [smem:[#allocation8_spill]] %s2513_s0 }
   0x2   :  { %2532 = sst [smem:[#allocation9_spill]] %s2514_s1 }
   0x3   :  { %19 = vsyncpa [#allocation3], 0 }
   0x4   :  { %21 = vsyncpa [#allocation3 + $0x1], 0  ;;  %s1978_s29 = smov 0   ;;  %s1980_s30 = smov 0  }
   0x5   :  { %s1982_s15 = smov 0   ;;  %s1984_s16 = smov 0  }
   0x6 LB: > { %2533 = sst [smem:[#allocation5_spill]] %s1888_s15  ;;  %s1999_s17 = sadd.s32 4294967295, %s1892_s16   ;;  %s1892_s16 = sphi %s1984_s16, %s2542_s16   ;;  %s1888_s15 = sphi %s1982_s15, %s2544_s15   ;;  %s1884_s30 = sphi %s1980_s30, %s2546_s30   ;;  %s1880_s29 = sphi %s1978_s29, %s2545_s29  }
   0x7   : > { %s1697_s18 = sadd.s32 4294967294, %s1892_s16   ;;  %s2003_s19 = sadd.s32 1, %s1892_s16  }
   0x8   : > { %2534 = sst [smem:[#allocation6_spill]] %s2003_s19  ;;  %s333_s20 = sadd.s32 1, %s1888_s15 }
   0x9   : > { %s330_s21 = ssub.s32 %s1892_s16, %s2003_s19  ;;  %p343_p0 = scmp.ne.s32.totalorder %s1888_s15, %s1884_s30 }
   0xa   : > { %p331_p1 = scmp.eq.s32.totalorder %s330_s21, 0  ;;  %p344_p2 = scmp.eq.s32.totalorder %s1999_s17, 1 }
   0xb   : > { %p349_p3 = scmp.ne.s32.totalorder %s1884_s30, %s1880_s29  ;;  %p350_p4 = scmp.eq.s32.totalorder %s1697_s18, 1 }
   0xc   : > { %s2014_s22 = scalar_select %p331_p1, %s1888_s15, %s333_s20  }
   0xd   : > { %p2016_p5 = por %p344_p2, %p343_p0  ;;  %p2020_p6 = por %p350_p4, %p349_p3 }
   0xe   : > { %2535 = sst [smem:[#allocation7_spill]] %s2014_s22  ;;  %p1700_p7 = scmp.ge.s32.totalorder %s1892_s16, 1 }
   0xf   : > { %p414_p8 = scmp.lt.s32.totalorder %s1892_s16, 3 }
  0x11   : > { %p415_p9 = pnand %p1700_p7, %p414_p8 }
  0x12   : > { %p459_p10 = scmp.lt.s32.totalorder (!%p415_p9), %s1999_s17, 1  ;;  %s2538_s0 = sld [smem:[#allocation8_spill]] (!%p415_p9) }
  0x13   : > { %418 = sbr.rel (%p415_p9) target bundleno = 1855 (0x73f), region = 76  ;;  %s2539_s1 = sld [smem:[#allocation9_spill]] (!%p415_p9) }
  0x14   : > { %s1895_s15 = smov (!%p415_p9), 112   ;;  %s1896_s19 = smov (!%p415_p9), 104  }
  0x15   : > { %s1897_s20 = smov (!%p415_p9), 120   ;;  %s1900_s21 = smov (!%p415_p9), 16  }
  0x18   : > { %s460_s25 = scalar_select %p459_p10, %s1999_s17, 1  ;;  %vm466_vm0 = vcmask 261120   ;;  %v1894_v2 = vmov 32.0   ;;  %v507_v14 = vld [vmem:[%s2516_s3 + $0x18] sm:$0xff]  ;;  %v506_v17 = vld [vmem:[%s2516_s3 + $0x10] sm:$0xff]  ;;  %v505_v20 = vld [vmem:[%s2516_s3 + $0x8] sm:$0xff] }
  0x19   : > { %1795 = vrcp.f32 %v1894_v2  ;;  %v534_v15 = vld [vmem:[%s2517_s4 + $0x18] sm:$0xff]  ;;  %523 = vmatpush.msra.mxu0 %v507_v14  ;;  %v533_v18 = vld [vmem:[%s2517_s4 + $0x10] sm:$0xff]  ;;  %v532_v21 = vld [vmem:[%s2517_s4 + $0x8] sm:$0xff]  ;;  %v1898_v46 = vmov 1983009808   ;;  %vm590_vm5 = vcmask 1047556  }
  0x1a   : > { %s1702_s26 = sshll.u32 %s460_s25, 3  ;;  %v558_v16 = vld [vmem:[%s2518_s5 + $0x18] sm:$0xff]  ;;  %547 = vmatpush.msra.mxu1 %v534_v15  ;;  %v557_v19 = vld [vmem:[%s2518_s5 + $0x10] sm:$0xff]  ;;  %v556_v22 = vld [vmem:[%s2518_s5 + $0x8] sm:$0xff]  ;;  %v595_v47 = vunpack.c.l.s4 %v1898_v46  ;;  %v1899_v58 = vmov 1934713408  }
  0x1b   : > { %s2031_s18 = scalar_lea.vmem %s2538_s0, %s1702_s26  ;;  %571 = vmatpush.msra.mxu2 %v558_v16  ;;  %524 = vmatpush.msra.mxu0 %v506_v17  ;;  %v504_v23 = vld [vmem:[%s2516_s3] sm:$0xff]  ;;  %v619_v59 = vunpack.c.l.s4 %v1899_v58  ;;  %vm940_vm6 = vcmask 64512   ;;  %s1901_s25 = smov 24  }
  0x1c   : > { %v463_v0 = vld [vmem:[%s2031_s18] sm:$0xff]  ;;  %548 = vmatpush.msra.mxu1 %v533_v18  ;;  %v2086_v54 = vunpack.c.0.s8 %v595_v47  ;;  %s1902_s26 = smov 8  }
  0x1d   : > { %v467_v1 = vsel %vm466_vm0, %v463_v0, 0.0  ;;  %572 = vmatpush.msra.mxu2 %v557_v19  ;;  %v531_v24 = vld [vmem:[%s2517_s4] sm:$0xff]  ;;  %525 = vmatpush.msra.mxu0 %v505_v20 }
  0x1e   : > { %468 = vadd.xlane.f32.xlu0 %v467_v1  ;;  %549 = vmatpush.msra.mxu1 %v532_v21  ;;  %v555_v25 = vld [vmem:[%s2518_s5] sm:$0xff] }
  0x1f   : > { %v1796_v3 = vpop.eup %1795  ;;  %573 = vmatpush.msra.mxu2 %v556_v22  ;;  %526 = vmatpush.msra.mxu0 %v504_v23  ;;  %v1788_v35 = vld [vmem:[%s2539_s1] ss:$0 sm:$0xff] }
  0x20   : > { %v471_v4 = vmul.f32 32.0, %v1796_v3  ;;  %vm475_vm1 = vweird.f32 %v1796_v3  ;;  %550 = vmatpush.msra.mxu1 %v531_v24  ;;  %v1789_v38 = vld [vmem:[%s2515_s2] ss:$0 sm:$0xff] }
  0x21   : > { %574 = vmatpush.msra.mxu2 %v555_v25 }
  0x22   : > { %v472_v5 = vsub.f32 1.0, %v471_v4 }
  0x24   : > { %v473_v6 = vmul.f32 %v1796_v3, %v472_v5 }
  0x26   : > { %v474_v7 = vadd.f32 %v1796_v3, %v473_v6  ;;  %v2098_v6 = vunpack.c.0.s8 %v619_v59 }
  0x28   : > { %v2035_v8 = vsel %vm475_vm1, %v1796_v3, %v474_v7 }
  0x91   : > { %v469_v9 = vpop.xlane.xlu0 %468 }
  0x92   : > { %v477_v10 = vmul.f32 %v2035_v8, %v469_v9 }
  0x94   : > { %v478_v11 = vsub.f32 %v463_v0, %v477_v10 }
  0x96   : > { %v479_v12 = vmul.f32 %v478_v11, %v478_v11 }
  0x98   : > { %v480_v13 = vsel %vm466_vm0, %v479_v12, 0.0 }
  0x99   : > { %481 = vadd.xlane.f32.xlu0 %v480_v13 }
 0x10c   : > { %v482_v26 = vpop.xlane.xlu0 %481 }
 0x10d   : > { %v483_v27 = vmul.f32 %v482_v26, %v2035_v8 }
 0x10f   : > { %v484_v28 = vadd.f32 1e-05, %v483_v27 }
 0x111   : > { %1797 = vrsqrt.f32 %v484_v28  ;;  %vm491_vm3 = vweird.f32 %v484_v28 }
 0x117   : > { %v1798_v29 = vpop.eup %1797 }
 0x118   : > { %v486_v30 = vmul.f32 %v1798_v29, %v484_v28  ;;  %vm492_vm2 = vweird.f32 %v1798_v29 }
 0x119   : > { %vm493_vm4 = vmor %vm491_vm3, %vm492_vm2 }
 0x11a   : > { %v487_v31 = vmul.f32 %v1798_v29, %v486_v30 }
 0x11c   : > { %v488_v32 = vmul.f32 0.5, %v487_v31 }
 0x11e   : > { %v489_v33 = vsub.f32 1.5, %v488_v32 }
 0x120   : > { %v490_v34 = vmul.f32 %v1798_v29, %v489_v33 }
 0x122   : > { %v494_v36 = vsel %vm493_vm4, %v1798_v29, %v490_v34 }
 0x123   : > { %v495_v37 = vmul.f32 %v494_v36, %v478_v11 }
 0x125   : > { %v499_v39 = vmul.f32 %v1788_v35, %v495_v37 }
 0x127   : > { %v503_v40 = vadd.f32 %v1789_v38, %v499_v39 }
 0x129   : > { %1703 = vmatmul.msk.f32.vlgmr.msra.gmra.mxu0 %vm466_vm0, %v503_v40  ;;  %1704 = vmatmul.msk.f32.vlgmr.msra.gmra.mxu1 %vm466_vm0, %v503_v40 }
 0x12a   : > { %1705 = vmatmul.msk.f32.vlgmr.msra.gmra.mxu2 %vm466_vm0, %v503_v40 }
 0x1a6   : > { %v528_v41 = vpop.f32.mrf.mxu0  ;;  %v552_v42 = vpop.f32.mrf.mxu1 }
 0x1a7   : > { %704 = vrot.lane.b32.xlu1 %v552_v42, %s1895_s15  ;;  %586 = vrot.lane.b32.xlu0 %v528_v41, %s1896_s19  ;;  %v712_v51 = vrot.slane %v552_v42, 4  ;;  %v592_v55 = vrot.slane %v528_v41, 4 }
 0x1a8   : > { %583 = vrot.lane.b32.xlu2 %v528_v41, %s1895_s15 }
 0x1ad   : > { %v576_v43 = vpop.f32.mrf.mxu2 }
 0x1ae   : > { %v832_v61 = vrot.slane %v576_v43, 4 }
 0x1af   : > { %707 = vrot.lane.b32.xlu1 %v552_v42, %s1896_s19 }
 0x1b0   : > { %701 = vrot.lane.b32.xlu2 %v552_v42, %s1897_s20 }
 0x1b7   : > { %580 = vrot.lane.b32.xlu1 %v528_v41, %s1897_s20 }
 0x1b8   : > { %824 = vrot.lane.b32.xlu2 %v576_v43, %s1895_s15  ;;  %s456_s15 = sand.u32 1, %s1884_s30  }
 0x1bf   : > { %827 = vrot.lane.b32.xlu1 %v576_v43, %s1896_s19  ;;  %s1737_s19 = sshll.u32 %s1999_s17, 3  ;;  %s1623_s17 = scalar_lea.sflag [#allocation3], %s456_s15 }
 0x1c0   : > { %821 = vrot.lane.b32.xlu2 %v576_v43, %s1897_s20 }
 0x202   : > { %v584_v44 = vpop.permute.xlu2 %583 }
 0x203   : > { %v589_v52 = vrot.slane %v584_v44, 4  ;;  %v593_v60 = vsel %vm590_vm5, %v584_v44, %v592_v55 }
 0x204   : > { %v2096_v5 = vperm.slane %v593_v60, %v2086_v54 }
 0x205   : > { %v591_v63 = vsel %vm590_vm5, %v589_v52, %v528_v41 }
 0x206   : > { %v597_v10 = vperm.slane %v591_v63, %v2086_v54  ;;  %v628_v20 = vrot.slane %v2096_v5, 4 }
 0x208   : > { %v616_v24 = vrot.slane %v597_v10, 4 }
 0x20a   : > { %v702_v45 = vpop.permute.xlu2 %701 }
 0x20b   : > { %v724_v0 = vrot.slane %v702_v45, 4 }
 0x212   : > { %v825_v49 = vpop.permute.xlu2 %824 }
 0x213   : > { %v830_v56 = vrot.slane %v825_v49, 4  ;;  %v833_v2 = vsel %vm590_vm5, %v825_v49, %v832_v61 }
 0x214   : > { %v2107_v14 = vperm.slane %v833_v2, %v2086_v54 }
 0x215   : > { %v831_v1 = vsel %vm590_vm5, %v830_v56, %v576_v43 }
 0x216   : > { %v2104_v13 = vperm.slane %v831_v1, %v2086_v54  ;;  %v868_v28 = vrot.slane %v2107_v14, 4 }
 0x218   : > { %v856_v32 = vrot.slane %v2104_v13, 4 }
 0x219   : > { %v705_v48 = vpop.permute.xlu1 %704  ;;  %v587_v21 = vpop.permute.xlu0 %586 }
 0x21a   : > { %v710_v50 = vrot.slane %v705_v48, 4  ;;  %v713_v53 = vsel %vm590_vm5, %v705_v48, %v712_v51  ;;  %v822_v22 = vpop.permute.xlu2 %821  ;;  %v602_v33 = vrot.slane %v587_v21, 4 }
 0x21b   : > { %v721_v62 = vperm.slane %v713_v53, %v2086_v54  ;;  %v844_v34 = vrot.slane %v822_v22, 4 }
 0x21c   : > { %v711_v57 = vsel %vm590_vm5, %v710_v50, %v552_v42 }
 0x21d   : > { %v717_v3 = vperm.slane %v711_v57, %v2086_v54  ;;  %v748_v11 = vrot.slane %v721_v62, 4 }
 0x21f   : > { %v736_v16 = vrot.slane %v717_v3, 4 }
 0x221   : > { %v708_v4 = vpop.permute.xlu1 %707 }
 0x222   : > { %v722_v7 = vrot.slane %v708_v4, 4  ;;  %v725_v9 = vsel %vm590_vm5, %v708_v4, %v724_v0 }
 0x223   : > { %v733_v12 = vperm.slane %v725_v9, %v2086_v54 }
 0x224   : > { %v723_v15 = vsel %vm590_vm5, %v722_v7, %v702_v45 }
 0x225   : > { %v729_v17 = vperm.slane %v723_v15, %v2086_v54  ;;  %v746_v18 = vrot.slane %v733_v12, 4  ;;  %v749_v19 = vsel %vm590_vm5, %v733_v12, %v748_v11 }
 0x226   : > { %v757_v23 = vperm.slane %v749_v19, %v2098_v6 }
 0x227   : > { %v734_v25 = vrot.slane %v729_v17, 4  ;;  %v737_v26 = vsel %vm590_vm5, %v729_v17, %v736_v16  ;;  %v747_v27 = vsel %vm590_vm5, %v746_v18, %v721_v62 }
 0x228   : > { %v745_v29 = vperm.slane %v737_v26, %v2098_v6  ;;  %v753_v30 = vperm.slane %v747_v27, %v2098_v6  ;;  %v764_v31 = vrot.slane %v757_v23, 4 }
 0x229   : > { %v735_v35 = vsel %vm590_vm5, %v734_v25, %v717_v3  ;;  %v581_v36 = vpop.permute.xlu1 %580 }
 0x22a   : > { %v741_v37 = vperm.slane %v735_v35, %v2098_v6  ;;  %v760_v38 = vrot.slane %v745_v29, 4  ;;  %v762_v39 = vrot.slane %v753_v30, 4  ;;  %v765_v40 = vsel %vm590_vm5, 0.0, %v764_v31 }
 0x22b   : > { %v777_v41 = vsel %vm590_vm5, %v764_v31, %v753_v30  ;;  %v782_v42 = vrot.slane %v765_v40, 4  ;;  %v603_v43 = vsel %vm590_vm5, %v602_v33, %v581_v36  ;;  %v604_v44 = vrot.slane %v581_v36, 4 }
 0x22c   : > { %v758_v45 = vrot.slane %v741_v37, 4  ;;  %v761_v46 = vsel %vm590_vm5, 0.0, %v760_v38  ;;  %v763_v47 = vsel %vm590_vm5, 0.0, %v762_v39  ;;  %v2128_v48 = vperm.slane %v777_v41, %v2086_v54 }
 0x22d   : > { %v771_v49 = vrot.slane %v761_v46, 4  ;;  %v605_v50 = vsel %vm590_vm5, %v587_v21, %v604_v44  ;;  %v609_v51 = vperm.slane %v603_v43, %v2086_v54  ;;  %v766_v52 = vsel %vm590_vm5, %v760_v38, %v741_v37 }
 0x22e   : > { %v613_v53 = vperm.slane %v605_v50, %v2086_v54  ;;  %v759_v55 = vsel %vm590_vm5, 0.0, %v758_v45  ;;  %v770_v56 = vperm.slane %v766_v52, %v2086_v54  ;;  %v783_v57 = vsel %vm590_vm5, %v782_v42, %v763_v47 }
 0x22f   : > { %v614_v58 = vrot.slane %v609_v51, 4  ;;  %v617_v59 = vsel %vm590_vm5, %v609_v51, %v616_v24  ;;  %v772_v60 = vsel %vm590_vm5, %v771_v49, %v759_v55  ;;  %v2140_v61 = vperm.slane %v783_v57, %v2086_v54 }
 0x230   : > { %v625_v62 = vperm.slane %v617_v59, %v2098_v6  ;;  %v626_v63 = vrot.slane %v613_v53, 4  ;;  %v629_v0 = vsel %vm590_vm5, %v613_v53, %v628_v20  ;;  %v776_v1 = vperm.slane %v772_v60, %v2086_v54 }
 0x231   : > { %v615_v2 = vsel %vm590_vm5, %v614_v58, %v597_v10  ;;  %v637_v3 = vperm.slane %v629_v0, %v2098_v6  ;;  %v828_v4 = vpop.permute.xlu1 %827  ;;  %v790_v7 = vrot.slane %v770_v56, 4  ;;  %v802_v9 = vrot.slane %v2128_v48, 4 }
 0x232   : > { %v621_v11 = vperm.slane %v615_v2, %v2098_v6  ;;  %v627_v12 = vsel %vm590_vm5, %v626_v63, %v2096_v5  ;;  %v640_v15 = vrot.slane %v625_v62, 4  ;;  %v842_v16 = vrot.slane %v828_v4, 4 }
 0x233   : > { %v633_v17 = vperm.slane %v627_v12, %v2098_v6  ;;  %v644_v18 = vrot.slane %v637_v3, 4  ;;  %v845_v19 = vsel %vm590_vm5, %v828_v4, %v844_v34  ;;  %v791_v10 = vsel %vm590_vm5, %v776_v1, %v790_v7 }
 0x234   : > { %v638_v20 = vrot.slane %v621_v11, 4  ;;  %v641_v21 = vsel %vm590_vm5, 0.0, %v640_v15  ;;  %v646_v23 = vsel %vm590_vm5, %v640_v15, %v621_v11  ;;  %v843_v24 = vsel %vm590_vm5, %v842_v16, %v822_v22 }
 0x235   : > { %v642_v25 = vrot.slane %v633_v17, 4  ;;  %v645_v5 = vsel %vm590_vm5, 0.0, %v644_v18  ;;  %v2159_v26 = vperm.slane %v646_v23, %v2086_v54  ;;  %v651_v27 = vrot.slane %v641_v21, 4 }
 0x236   : > { %v639_v29 = vsel %vm590_vm5, 0.0, %v638_v20  ;;  %v662_v30 = vrot.slane %v645_v5, 4  ;;  %v849_v31 = vperm.slane %v843_v24, %v2086_v54  ;;  %v853_v33 = vperm.slane %v845_v19, %v2086_v54 }
 0x237   : > { %v652_v34 = vsel %vm590_vm5, %v651_v27, %v639_v29  ;;  %v799_v35 = vperm.slane %v791_v10, %v2098_v6  ;;  %v803_v22 = vsel %vm590_vm5, %v2140_v61, %v802_v9  ;;  %v788_v36 = vrot.slane %v776_v1, 4 }
 0x238   : > { %v656_v37 = vperm.slane %v652_v34, %v2086_v54  ;;  %v854_v38 = vrot.slane %v849_v31, 4  ;;  %v857_v39 = vsel %vm590_vm5, %v849_v31, %v856_v32  ;;  %v866_v40 = vrot.slane %v853_v33, 4 }
 0x239   : > { %v865_v41 = vperm.slane %v857_v39, %v2098_v6  ;;  %v869_v42 = vsel %vm590_vm5, %v853_v33, %v868_v28  ;;  %v811_v43 = vperm.slane %v803_v22, %v2098_v6  ;;  %v818_v44 = vrot.slane %v799_v35, 4 }
 0x23a   : > { %v855_v45 = vsel %vm590_vm5, %v854_v38, %v2104_v13  ;;  %v867_v46 = vsel %vm590_vm5, %v866_v40, %v2107_v14  ;;  %v877_v47 = vperm.slane %v869_v42, %v2098_v6  ;;  %v789_v32 = vsel %vm590_vm5, %v788_v36, %v770_v56 }
 0x23b   : > { %v861_v49 = vperm.slane %v855_v45, %v2098_v6  ;;  %v873_v50 = vperm.slane %v867_v46, %v2098_v6  ;;  %v880_v51 = vrot.slane %v865_v41, 4  ;;  %v816_v52 = vrot.slane %v811_v43, 4 }
 0x23c   : > { %v884_v28 = vrot.slane %v877_v47, 4  ;;  %v795_v53 = vperm.slane %v789_v32, %v2098_v6  ;;  %v800_v55 = vrot.slane %v2140_v61, 4  ;;  %v819_v13 = vsel %vm590_vm5, %v811_v43, %v818_v44 }
 0x23d   : > { %v878_v57 = vrot.slane %v861_v49, 4  ;;  %v881_v14 = vsel %vm590_vm5, 0.0, %v880_v51  ;;  %v882_v58 = vrot.slane %v873_v50, 4  ;;  %v817_v59 = vsel %vm590_vm5, %v816_v52, %v799_v35 }
 0x23e   : > { %v885_v56 = vsel %vm590_vm5, 0.0, %v884_v28  ;;  %v891_v60 = vrot.slane %v881_v14, 4  ;;  %v897_v62 = vsel %vm590_vm5, %v884_v28, %v873_v50  ;;  %1710 = vmatpush.xpose.msk.msrb.mxu0 %vm940_vm6, %v817_v59  ;;  %v801_v63 = vsel %vm590_vm5, %v800_v55, %v2128_v48 }
 0x23f   : > { %v883_v61 = vsel %vm590_vm5, 0.0, %v882_v58  ;;  %v901_v0 = vperm.slane %v897_v62, %v2086_v54  ;;  %v902_v1 = vrot.slane %v885_v56, 4  ;;  %v807_v2 = vperm.slane %v801_v63, %v2098_v6 }
 0x240   : > { %v814_v3 = vrot.slane %v795_v53, 4  ;;  %v643_v4 = vsel %vm590_vm5, 0.0, %v642_v25  ;;  %v657_v7 = vsel %vm590_vm5, %v644_v18, %v633_v17  ;;  %v668_v9 = vrot.slane %v656_v37, 4 }
 0x241   : > { %v903_v11 = vsel %vm590_vm5, %v902_v1, %v883_v61  ;;  %v812_v12 = vrot.slane %v807_v2, 4  ;;  %v661_v15 = vperm.slane %v657_v7, %v2086_v54  ;;  %v663_v48 = vsel %vm590_vm5, %v662_v30, %v643_v4 }
 0x242   : > { %v815_v16 = vsel %vm590_vm5, %v807_v2, %v814_v3  ;;  %v667_v19 = vperm.slane %v663_v48, %v2086_v54  ;;  %v669_v10 = vsel %vm590_vm5, %v668_v9, %v2159_v26  ;;  %v670_v20 = vrot.slane %v2159_v26, 4 }
 0x243   : > { %v813_v21 = vsel %vm590_vm5, %v812_v12, %v795_v53  ;;  %1708 = vmatpush.xpose.msk.msrb.mxu2 %vm940_vm6, %v815_v16  ;;  %v675_v17 = vperm.slane %v669_v10, %v2098_v6  ;;  %v682_v18 = vrot.slane %v661_v15, 4  ;;  %v879_v23 = vsel %vm590_vm5, 0.0, %v878_v57 }
 0x244   : > { %1706 = vmatpush.xpose.msk.msrb.mxu1 %vm940_vm6, %v813_v21  ;;  %v680_v24 = vrot.slane %v667_v19, 4  ;;  %v886_v25 = vsel %vm590_vm5, %v880_v51, %v861_v49  ;;  %v892_v5 = vsel %vm590_vm5, %v891_v60, %v879_v23  ;;  %v671_v26 = vsel %vm590_vm5, %v656_v37, %v670_v20 }
 0x245   : > { %v694_v27 = vrot.slane %v675_v17, 4  ;;  %v683_v29 = vsel %vm590_vm5, %v667_v19, %v682_v18  ;;  %v890_v30 = vperm.slane %v886_v25, %v2086_v54  ;;  %v896_v34 = vperm.slane %v892_v5, %v2086_v54 }
 0x246   : > { %v681_v31 = vsel %vm590_vm5, %v680_v24, %v661_v15  ;;  %v691_v33 = vperm.slane %v683_v29, %v2098_v6  ;;  %v907_v35 = vperm.slane %v903_v11, %v2086_v54  ;;  %v922_v38 = vrot.slane %v901_v0, 4 }
 0x247   : > { %v687_v22 = vperm.slane %v681_v31, %v2098_v6  ;;  %v910_v36 = vrot.slane %v890_v30, 4  ;;  %v679_v39 = vperm.slane %v671_v26, %v2098_v6  ;;  %v908_v37 = vrot.slane %v896_v34, 4 }
 0x248   : > { %1712 = vmatpush.xpose.msk.msra.mxu1 %vm940_vm6, %v819_v13  ;;  %v696_v40 = vrot.slane %v691_v33, 4  ;;  %v920_v41 = vrot.slane %v907_v35, 4  ;;  %v923_v45 = vsel %vm590_vm5, %v907_v35, %v922_v38 }
 0x249   : > { %v695_v42 = vsel %vm590_vm5, %v687_v22, %v694_v27  ;;  %v692_v43 = vrot.slane %v687_v22, 4  ;;  %v911_v44 = vsel %vm590_vm5, %v896_v34, %v910_v36  ;;  %v931_v32 = vperm.slane %v923_v45, %v2098_v6 }
 0x24a   : > { %1709 = vmatmul.msk.f32.vlgmr.msrb.gmra.mxu2 %vm940_vm6, %v695_v42  ;;  %v697_v46 = vsel %vm590_vm5, %v696_v40, %v679_v39  ;;  %v919_v47 = vperm.slane %v911_v44, %v2098_v6  ;;  %v909_v49 = vsel %vm590_vm5, %v908_v37, %v890_v30  ;;  %v921_v52 = vsel %vm590_vm5, %v920_v41, %v901_v0 }
 0x24b   : > { %1711 = vmatmul.msk.f32.vlgmr.msrb.gmra.mxu0 %vm940_vm6, %v697_v46  ;;  %v693_v50 = vsel %vm590_vm5, %v692_v43, %v675_v17  ;;  %v915_v51 = vperm.slane %v909_v49, %v2098_v6  ;;  %v936_v28 = vrot.slane %v931_v32, 4  ;;  %v927_v53 = vperm.slane %v921_v52, %v2098_v6 }
 0x24c   : > { %1707 = vmatmul.msk.f32.vlgmr.msrb.gmra.mxu1 %vm940_vm6, %v693_v50  ;;  %v698_v14 = vrot.slane %v679_v39, 4  ;;  %v938_v56 = vrot.slane %v919_v47, 4 }
 0x24d   : > { %v934_v55 = vrot.slane %v915_v51, 4  ;;  %v937_v13 = vsel %vm590_vm5, %v936_v28, %v919_v47  ;;  %v932_v57 = vrot.slane %v927_v53, 4 }
 0x24e   : > { %1165 = vmatpush.msra.mxu0 %v937_v13  ;;  %v699_v60 = vsel %vm590_vm5, %v691_v33, %v698_v14  ;;  %v939_v62 = vsel %vm590_vm5, %v931_v32, %v938_v56 }
 0x24f   : > { %v935_v58 = vsel %vm590_vm5, %v927_v53, %v934_v55  ;;  %v933_v59 = vsel %vm590_vm5, %v932_v57, %v915_v51 }
 0x250   : > { %1142 = vmatpush.msrb.mxu1 %v935_v58  ;;  %1119 = vmatpush.msra.mxu2 %v933_v59 }
 0x254   : > { %1713 = vmatmul.msk.f32.vlgmr.msra.gmra.mxu1 %vm940_vm6, %v699_v60 }
 0x255   : > { %1188 = vmatpush.msra.mxu1 %v939_v62 }
 0x2c8   : > { %v1016_v63 = vpop.f32.mrf.mxu0 }
 0x2c9   : > { %v1051_v61 = vsel %vm940_vm6, %v1016_v63, -inf  ;;  %v964_v0 = vpop.f32.mrf.mxu1 }
 0x2ca   : > { %1052 = vmax.xlane.f32.xlu0 %v1051_v61  ;;  %v1045_v1 = vsel %vm940_vm6, %v964_v0, -inf }
 0x2cb   : > { %1046 = vmax.xlane.f32.xlu2 %v1045_v1 }
 0x2cd   : > { %v990_v2 = vpop.f32.mrf.mxu2 }
 0x2ce   : > { %v1048_v3 = vsel %vm940_vm6, %v990_v2, -inf }
 0x2cf   : > { %1049 = vmax.xlane.f32.xlu1 %v1048_v3 }
 0x2d1   : > { %v1042_v4 = vpop.f32.mrf.mxu1 }
 0x2d2   : > { %v1054_v7 = vsel %vm940_vm6, %v1042_v4, -inf }
 0x2d3   : > { %1055 = vmax.xlane.f32.xlu2 %v1054_v7 }
 0x33d   : > { %v1053_v9 = vpop.xlane.xlu0 %1052 }
 0x33e   : > { %v1071_v11 = vsub.f32 %v1016_v63, %v1053_v9  ;;  %v1047_v12 = vpop.xlane.xlu2 %1046  ;;  %v1059_v31 = vsub.f32 -inf, %v1053_v9 }
 0x33f   : > { %v1069_v15 = vsub.f32 %v964_v0, %v1047_v12  ;;  %v1057_v33 = vsub.f32 -inf, %v1047_v12 }
 0x340   : > { %v1077_v48 = vmul.f32 1.442695, %v1071_v11  ;;  %v1065_v34 = vmul.f32 1.442695, %v1059_v31 }
 0x341   : > { %v1073_v16 = vmul.f32 1.442695, %v1069_v15  ;;  %v1061_v35 = vmul.f32 1.442695, %v1057_v33 }
 0x342   : > { %v1050_v19 = vpop.xlane.xlu1 %1049  ;;  %1799 = vpow2.f32 %v1077_v48 }
 0x343   : > { %v1070_v10 = vsub.f32 %v990_v2, %v1050_v19  ;;  %1801 = vpow2.f32 %v1073_v16  ;;  %v1058_v22 = vsub.f32 -inf, %v1050_v19 }
 0x345   : > { %v1075_v20 = vmul.f32 1.442695, %v1070_v10  ;;  %v1063_v38 = vmul.f32 1.442695, %v1058_v22 }
 0x346   : > { %v1056_v21 = vpop.xlane.xlu2 %1055 }
 0x347   : > { %v1072_v17 = vsub.f32 %v1042_v4, %v1056_v21  ;;  %1803 = vpow2.f32 %v1075_v20  ;;  %v1060_v36 = vsub.f32 -inf, %v1056_v21 }
 0x348   : > { %v1800_v18 = vpop.eup %1799 }
 0x349   : > { %v1079_v23 = vmul.f32 1.442695, %v1072_v17  ;;  %1716 = vmatmul.msk.f32.vlgmr.msra.gmra.mxu0 %vm940_vm6, %v1800_v18  ;;  %v1091_v24 = vsel %vm940_vm6, %v1800_v18, 0.0  ;;  %v1802_v25 = vpop.eup %1801  ;;  %v1067_v39 = vmul.f32 1.442695, %v1060_v36 }
 0x34a   : > { %1092 = vadd.xlane.f32.xlu1 %v1091_v24  ;;  %1714 = vmatmul.msk.f32.vlgmr.msra.gmra.mxu2 %vm940_vm6, %v1802_v25  ;;  %v1085_v5 = vsel %vm940_vm6, %v1802_v25, 0.0 }
 0x34b   : > { %1805 = vpow2.f32 %v1079_v23  ;;  %1086 = vadd.xlane.f32.xlu0 %v1085_v5 }
 0x34c   : > { %1807 = vpow2.f32 %v1065_v34 }
 0x34d   : > { %v1804_v27 = vpop.eup %1803  ;;  %1809 = vpow2.f32 %v1061_v35 }
 0x34e   : > { %1715 = vmatmul.msk.f32.vlgmr.msrb.gmra.mxu1 %vm940_vm6, %v1804_v27  ;;  %v1088_v29 = vsel %vm940_vm6, %v1804_v27, 0.0  ;;  %1811 = vpow2.f32 %v1063_v38 }
 0x34f   : > { %1813 = vpow2.f32 %v1067_v39 }
 0x351   : > { %v1806_v26 = vpop.eup %1805 }
 0x352   : > { %1089 = vadd.xlane.f32.xlu1 %v1088_v29  ;;  %v1094_v30 = vsel %vm940_vm6, %v1806_v26, 0.0  ;;  %v1808_v40 = vpop.eup %1807 }
 0x353   : > { %1095 = vadd.xlane.f32.xlu2 %v1094_v30  ;;  %v1810_v37 = vpop.eup %1809  ;;  %v1083_v41 = vmul.f32 0.0, %v1808_v40 }
 0x354   : > { %v1081_v44 = vmul.f32 0.0, %v1810_v37  ;;  %v1812_v47 = vpop.eup %1811 }
 0x355   : > { %v1814_v32 = vpop.eup %1813  ;;  %v2257_v49 = vmul.f32 0.0, %v1812_v47 }
 0x356   : > { %1717 = vmatmul.msk.f32.vlgmr.msra.gmra.mxu1 %vm940_vm6, %v1806_v26  ;;  %v2259_v51 = vmul.f32 0.0, %v1814_v32 }
 0x3bd   : > { %v1093_v42 = vpop.xlane.xlu1 %1092 }
 0x3be   : > { %v1099_v43 = vadd.f32 %v1093_v42, %v1083_v41  ;;  %v1087_v45 = vpop.xlane.xlu0 %1086 }
 0x3bf   : > { %v1097_v46 = vadd.f32 %v1087_v45, %v1081_v44 }
 0x3c0   : > { %1815 = vrcp.f32 %v1099_v43  ;;  %v1234_v59 = vand.u32 2147483647, %v1099_v43  ;;  %v1236_v56 = vand.u32 2147483648, %v1099_v43  ;;  %vm1230_vm8 = vweird.f32 %v1099_v43 }
 0x3c1   : > { %1817 = vrcp.f32 %v1097_v46  ;;  %v1206_v61 = vand.u32 2147483647, %v1097_v46  ;;  %v1208_v1 = vand.u32 2147483648, %v1097_v46  ;;  %vm1202_vm11 = vweird.f32 %v1097_v46 }
 0x3c2   : > { %vm1235_vm10 = vcmp.eq.f32.partialorder %v1234_v59, 8.507059e+37  ;;  %v1237_v7 = vor.u32 1.1754944e-38, %v1236_v56 }
 0x3c3   : > { %vm2266_vm13 = vcmp.eq.f32.partialorder %v1206_v61, 8.507059e+37  ;;  %v1209_v21 = vor.u32 1.1754944e-38, %v1208_v1 }
 0x3c5   : > { %v1090_v50 = vpop.xlane.xlu1 %1089 }
 0x3c6   : > { %v1816_v52 = vpop.eup %1815  ;;  %v1098_v28 = vadd.f32 %v1090_v50, %v2257_v49  ;;  %v1096_v53 = vpop.xlane.xlu2 %1095 }
 0x3c7   : > { %v1226_v55 = vmul.f32 %v1816_v52, %v1099_v43  ;;  %v2263_v13 = vadd.f32 %v1096_v53, %v2259_v51  ;;  %v1818_v57 = vpop.eup %1817  ;;  %vm1231_vm7 = vweird.f32 %v1816_v52  ;;  %v1167_v0 = vpop.f32.mrf.mxu0 }
 0x3c8   : > { %1819 = vrcp.f32 %v1098_v28  ;;  %v1198_v58 = vmul.f32 %v1818_v57, %v1097_v46  ;;  %vm1232_vm9 = vmor %vm1230_vm8, %vm1231_vm7  ;;  %vm1203_vm12 = vweird.f32 %v1818_v57  ;;  %v1195_v12 = vadd.f32 %v1167_v0, %v1083_v41 }
 0x3c9   : > { %v1227_v14 = vsub.f32 1.0, %v1226_v55  ;;  %1821 = vrcp.f32 %v2263_v13  ;;  %v1220_v23 = vand.u32 2147483647, %v1098_v28  ;;  %v1222_v24 = vand.u32 2147483648, %v1098_v28  ;;  %vm1204_vm14 = vmor %vm1202_vm11, %vm1203_vm12 }
 0x3ca   : > { %v1199_v60 = vsub.f32 1.0, %v1198_v58  ;;  %v1248_v26 = vand.u32 2147483647, %v2263_v13  ;;  %v1250_v31 = vand.u32 2147483648, %v2263_v13  ;;  %vm1216_vm2 = vweird.f32 %v1098_v28 }
 0x3cb   : > { %v1228_v62 = vmul.f32 %v1816_v52, %v1227_v14  ;;  %v1144_v63 = vpop.f32.mrf.mxu1  ;;  %vm1221_vm3 = vcmp.eq.f32.partialorder %v1220_v23, 8.507059e+37  ;;  %v1223_v38 = vor.u32 1.1754944e-38, %v1222_v24  ;;  %vm1244_vm7 = vweird.f32 %v2263_v13 }
 0x3cc   : > { %v1200_v3 = vmul.f32 %v1818_v57, %v1199_v60  ;;  %v1194_v39 = vadd.f32 %v1144_v63, %v2257_v49  ;;  %v1251_v43 = vor.u32 1.1754944e-38, %v1250_v31 }
 0x3cd   : > { %v1229_v2 = vadd.f32 %v1816_v52, %v1228_v62  ;;  %v1121_v48 = vpop.f32.mrf.mxu2 }
 0x3ce   : > { %v1820_v4 = vpop.eup %1819  ;;  %v1201_v20 = vadd.f32 %v1818_v57, %v1200_v3  ;;  %v1193_v5 = vadd.f32 %v1121_v48, %v1081_v44 }
 0x3cf   : > { %v1822_v9 = vpop.eup %1821  ;;  %v1212_v11 = vmul.f32 %v1820_v4, %v1098_v28  ;;  %v1233_v15 = vsel %vm1232_vm9, %v1816_v52, %v1229_v2  ;;  %vm1217_vm15 = vweird.f32 %v1820_v4  ;;  %vm1249_vm9 = vcmp.eq.f32.partialorder %v1248_v26, 8.507059e+37 }
 0x3d0   : > { %v1238_v19 = vsel %vm1235_vm10, %v1237_v7, %v1233_v15  ;;  %v1240_v10 = vmul.f32 %v1822_v9, %v2263_v13  ;;  %v1205_v27 = vsel %vm1204_vm14, %v1818_v57, %v1201_v20  ;;  %vm1245_vm1 = vweird.f32 %v1822_v9  ;;  %vm1218_vm4 = vmor %vm1216_vm2, %vm1217_vm15 }
 0x3d1   : > { %v1213_v17 = vsub.f32 1.0, %v1212_v11  ;;  %v1255_v18 = vmul.f32 %v1238_v19, %v1195_v12  ;;  %v1210_v30 = vsel %vm2266_vm13, %v1209_v21, %v1205_v27  ;;  %vm1246_vm8 = vmor %vm1244_vm7, %vm1245_vm1  ;;  %vm1382_vm10 = vcmask 195584  }
 0x3d2   : > { %v1241_v25 = vsub.f32 1.0, %v1240_v10  ;;  %v1253_v34 = vmul.f32 %v1210_v30, %v1193_v5 }
 0x3d3   : > { %v1214_v29 = vmul.f32 %v1820_v4, %v1213_v17  ;;  %v1257_v33 = vrot.slane %v1255_v18, 4  ;;  %v1190_v35 = vpop.f32.mrf.mxu1 }
 0x3d4   : > { %v1242_v22 = vmul.f32 %v1822_v9, %v1241_v25  ;;  %v1259_v40 = vrot.slane %v1253_v34, 4  ;;  %v1196_v42 = vadd.f32 %v1190_v35, %v2259_v51 }
 0x3d5   : > { %v1215_v36 = vadd.f32 %v1820_v4, %v1214_v29  ;;  %v1258_v45 = vsel %vm590_vm5, %v1257_v33, %v1253_v34 }
 0x3d6   : > { %v1243_v37 = vadd.f32 %v1822_v9, %v1242_v22  ;;  %v1260_v46 = vsel %vm590_vm5, %v1255_v18, %v1259_v40  ;;  %v1264_v53 = vperm.slane %v1258_v45, %v2086_v54 }
 0x3d7   : > { %v1219_v41 = vsel %vm1218_vm4, %v1820_v4, %v1215_v36  ;;  %v1268_v49 = vperm.slane %v1260_v46, %v2086_v54 }
 0x3d8   : > { %v1224_v44 = vsel %vm1221_vm3, %v1223_v38, %v1219_v41  ;;  %v1247_v47 = vsel %vm1246_vm8, %v1822_v9, %v1243_v37  ;;  %v1283_v58 = vrot.slane %v1264_v53, 4 }
 0x3d9   : > { %v1254_v32 = vmul.f32 %v1224_v44, %v1194_v39  ;;  %v1252_v50 = vsel %vm1249_vm9, %v1251_v43, %v1247_v47  ;;  %v1295_v13 = vrot.slane %v1268_v49, 4  ;;  %v1386_v47 = vld [vmem:[%s2519_s6 + $0x10] sm:$0xff] }
 0x3da   : > { %v1256_v52 = vmul.f32 %v1252_v50, %v1196_v42  ;;  %v1384_v50 = vld [vmem:[%s2519_s6] sm:$0xff] }
 0x3db   : > { %v1271_v28 = vrot.slane %v1254_v32, 4 }
 0x3dc   : > { %v1269_v55 = vrot.slane %v1256_v52, 4 }
 0x3dd   : > { %v1272_v51 = vsel %vm590_vm5, %v1256_v52, %v1271_v28 }
 0x3de   : > { %v1270_v57 = vsel %vm590_vm5, %v1269_v55, %v1254_v32  ;;  %v1280_v14 = vperm.slane %v1272_v51, %v2086_v54  ;;  %v1385_v32 = vld [vmem:[%s2519_s6 + $0x8] sm:$0xff] }
 0x3df   : > { %v1276_v59 = vperm.slane %v1270_v57, %v2086_v54 }
 0x3e0   : > { %v1293_v56 = vrot.slane %v1280_v14, 4  ;;  %v1296_v60 = vsel %vm590_vm5, %v1280_v14, %v1295_v13  ;;  %v1790_v13 = vld [vmem:[%s2520_s7] ss:$0 sm:$0xff] }
 0x3e1   : > { %v1281_v62 = vrot.slane %v1276_v59, 4  ;;  %v1284_v63 = vsel %vm590_vm5, %v1276_v59, %v1283_v58  ;;  %v1304_v61 = vperm.slane %v1296_v60, %v2098_v6  ;;  %v1829_v58 = vld [vmem:[%s2031_s18] sm:$0xff]  ;;  %v1463_v60 = vld [vmem:[%s2523_s10 + $0x78] sm:$0xff]  ;;  %s1701_s18 = sshll.u32 %s456_s15, 3 }
 0x3e2   : > { %v1292_v0 = vperm.slane %v1284_v63, %v2098_v6  ;;  %v1294_v1 = vsel %vm590_vm5, %v1293_v56, %v1268_v49  ;;  %1719 = vmatpush.xpose.msk.msra.mxu3 %vm466_vm0, %v1463_v60  ;;  %v1461_v63 = vld [vmem:[%s2523_s10 + $0x68] sm:$0xff]  ;;  %s458_s28 = scalar_lea.vmem [#allocation2], %s1701_s18  ;;  %s1850_s18 = scalar_lea.hbm %s2527_s14, 16 }
 0x3e3   : > { %v1282_v2 = vsel %vm590_vm5, %v1281_v62, %v1264_v53  ;;  %v1300_v3 = vperm.slane %v1294_v1, %v2098_v6  ;;  %v1311_v4 = vrot.slane %v1304_v61, 4  ;;  %v1462_v62 = vld [vmem:[%s2523_s10 + $0x70] sm:$0xff]  ;;  %v1460_v61 = vld [vmem:[%s2523_s10 + $0x60] sm:$0xff]  ;;  %v1580_v60 = vld [vmem:[%s2525_s12 + $0x8] sm:$0xff]  ;;  %s1635_s0 = sshll.u32 %s458_s28, 4  ;;  %s1636_s0 = int_to_ptr.vmem [resolvable:$true] %s1635_s0 }
 0x3e4   : > { %v1288_v7 = vperm.slane %v1282_v2, %v2098_v6  ;;  %v1307_v9 = vrot.slane %v1292_v0, 4  ;;  %v1459_v0 = vld [vmem:[%s2523_s10 + $0x58] sm:$0xff]  ;;  %v1458_v1 = vld [vmem:[%s2523_s10 + $0x50] sm:$0xff]  ;;  %v1457_v2 = vld [vmem:[%s2523_s10 + $0x48] sm:$0xff] }
 0x3e5   : > { %v1309_v11 = vrot.slane %v1300_v3, 4  ;;  %v1312_v12 = vsel %vm590_vm5, 0.0, %v1311_v4  ;;  %v1324_v15 = vsel %vm590_vm5, %v1311_v4, %v1300_v3 }
 0x3e6   : > { %v1329_v48 = vrot.slane %v1312_v12, 4  ;;  %v1305_v16 = vrot.slane %v1288_v7, 4  ;;  %v1308_v19 = vsel %vm590_vm5, 0.0, %v1307_v9  ;;  %v1313_v10 = vsel %vm590_vm5, %v1307_v9, %v1288_v7  ;;  %1720 = vmatpush.xpose.msk.msra.mxu3 %vm466_vm0, %v1462_v62  ;;  %v1456_v7 = vld [vmem:[%s2523_s10 + $0x40] sm:$0xff]  ;;  %v1455_v12 = vld [vmem:[%s2523_s10 + $0x38] sm:$0xff] }
 0x3e7   : > { %v1310_v20 = vsel %vm590_vm5, 0.0, %v1309_v11  ;;  %v1317_v21 = vperm.slane %v1313_v10, %v2086_v54  ;;  %v1318_v17 = vrot.slane %v1308_v19, 4  ;;  %v1328_v18 = vperm.slane %v1324_v15, %v2086_v54  ;;  %v1452_v19 = vld [vmem:[%s2523_s10 + $0x20] sm:$0xff]  ;;  %v1451_v10 = vld [vmem:[%s2523_s10 + $0x18] sm:$0xff] }
 0x3e8   : > { %v1306_v23 = vsel %vm590_vm5, 0.0, %v1305_v16  ;;  %v1330_v24 = vsel %vm590_vm5, %v1329_v48, %v1310_v20  ;;  %v1454_v48 = vld [vmem:[%s2523_s10 + $0x30] sm:$0xff]  ;;  %v1453_v16 = vld [vmem:[%s2523_s10 + $0x28] sm:$0xff] }
 0x3e9   : > { %v1319_v25 = vsel %vm590_vm5, %v1318_v17, %v1306_v23  ;;  %v1334_v5 = vperm.slane %v1330_v24, %v2086_v54  ;;  %v1337_v27 = vrot.slane %v1317_v21, 4  ;;  %v1349_v26 = vrot.slane %v1328_v18, 4  ;;  %v1450_v20 = vld [vmem:[%s2523_s10 + $0x10] sm:$0xff]  ;;  %v1448_v17 = vld [vmem:[%s2523_s10] sm:$0xff] }
 0x3ea   : > { %v1323_v29 = vperm.slane %v1319_v25, %v2086_v54  ;;  %1721 = vmatpush.xpose.msk.msra.mxu3 %vm466_vm0, %v1461_v63  ;;  %v1579_v63 = vld [vmem:[%s2525_s12] sm:$0xff] }
 0x3eb   : > { %v1350_v30 = vsel %vm590_vm5, %v1334_v5, %v1349_v26  ;;  %v1347_v31 = vrot.slane %v1334_v5, 4 }
 0x3ec   : > { %v1338_v33 = vsel %vm590_vm5, %v1323_v29, %v1337_v27  ;;  %v1358_v34 = vperm.slane %v1350_v30, %v2098_v6  ;;  %v1335_v35 = vrot.slane %v1323_v29, 4 }
 0x3ed   : > { %v1346_v22 = vperm.slane %v1338_v33, %v2098_v6  ;;  %v1348_v36 = vsel %vm590_vm5, %v1347_v31, %v1328_v18  ;;  %v1791_v31 = vld [vmem:[%s2521_s8] ss:$0 sm:$0xff] }
 0x3ee   : > { %v1363_v38 = vrot.slane %v1358_v34, 4  ;;  %v1336_v39 = vsel %vm590_vm5, %v1335_v35, %v1317_v21  ;;  %v1354_v40 = vperm.slane %v1348_v36, %v2098_v6  ;;  %1722 = vmatpush.xpose.msk.msra.mxu3 %vm466_vm0, %v1460_v61  ;;  %v1449_v21 = vld [vmem:[%s2523_s10 + $0x8] sm:$0xff]  ;;  %v1594_v36 = vld [vmem:[%s2525_s12 + $0x78] sm:$0xff] }
 0x3ef   : > { %v1365_v37 = vrot.slane %v1346_v22, 4  ;;  %v1342_v54 = vperm.slane %v1336_v39, %v2098_v6  ;;  %v1387_v6 = vld [vmem:[%s2519_s6 + $0x18] sm:$0xff]  ;;  %1595 = vmatpush.msrb.mxu0 %v1594_v36  ;;  %v1593_v39 = vld [vmem:[%s2525_s12 + $0x70] sm:$0xff] }
 0x3f0   : > { %v1364_v41 = vsel %vm590_vm5, %v1363_v38, %v1346_v22  ;;  %v1359_v42 = vrot.slane %v1354_v40, 4  ;;  %1407 = vmatpush.msrb.mxu2 %v1387_v6  ;;  %v1793_v38 = vld [vmem:[%s2524_s11] ss:$0 sm:$0xff]  ;;  %v1588_v6 = vld [vmem:[%s2525_s12 + $0x48] sm:$0xff] }
 0x3f1   : > { %1372 = vrot.lane.b32.xlu2 %v1364_v41, %s1900_s21  ;;  %v1366_v43 = vsel %vm590_vm5, %v1358_v34, %v1365_v37  ;;  %v1361_v44 = vrot.slane %v1342_v54, 4  ;;  %1596 = vmatpush.msrb.mxu0 %v1593_v39  ;;  %v1592_v37 = vld [vmem:[%s2525_s12 + $0x68] sm:$0xff]  ;;  %v1591_v41 = vld [vmem:[%s2525_s12 + $0x60] sm:$0xff] }
 0x3f2   : > { %1376 = vrot.lane.b32.xlu1 %v1366_v43, %s1901_s25  ;;  %v1360_v45 = vsel %vm590_vm5, %v1359_v42, %v1342_v54  ;;  %1408 = vmatpush.msrb.mxu2 %v1386_v47  ;;  %v1590_v43 = vld [vmem:[%s2525_s12 + $0x58] sm:$0xff]  ;;  %s1633_s25 = scalar_lea.hbm %s2527_s14, %s1737_s19 }
 0x3f3   : > { %v1362_v46 = vsel %vm590_vm5, %v1354_v40, %v1361_v44  ;;  %vm1380_vm5 = vcmask 130048   ;;  %1723 = vmatpush.xpose.msk.msra.mxu3 %vm466_vm0, %v1459_v0  ;;  %1597 = vmatpush.msrb.mxu0 %v1592_v37  ;;  %s1637_s22 = sshll.u32 %s1633_s25, 4  ;;  %s1638_s22 = int_to_ptr.hbm [resolvable:$true] %s1637_s22 }
 0x3f4   : > { %1368 = vrot.lane.b32.xlu0 %v1362_v46, %s1902_s26  ;;  %1409 = vmatpush.msrb.mxu2 %v1385_v32  ;;  %v1587_v32 = vld [vmem:[%s2525_s12 + $0x40] sm:$0xff]  ;;  %s1844_s1 = sshra.s32 %s1638_s22, 4  ;;  %s1845_s1 = int_to_ptr.hbm [resolvable:$true] %s1844_s1 }
 0x3f5   : > { %1598 = vmatpush.msrb.mxu0 %v1591_v41  ;;  %s1846_s19 = scalar_lea.hbm %s1845_s1, 8  ;;  %p1851_p0 = scmp.lt.s32.totalorder %s1845_s1, %s2527_s14 }
 0x3f6   : > { %1410 = vmatpush.msrb.mxu2 %v1384_v50  ;;  %v1586_v50 = vld [vmem:[%s2525_s12 + $0x38] sm:$0xff]  ;;  %p1847_p11 = scmp.ne.s32.totalorder %s1845_s1, %s1846_s19  ;;  %p1852_p1 = scmp.lt.s32.totalorder %s1850_s18, %s1846_s19 }
 0x3f7   : > { %1724 = vmatpush.xpose.msk.msra.mxu3 %vm466_vm0, %v1458_v1  ;;  %1599 = vmatpush.msrb.mxu0 %v1590_v43 }
 0x3f8   : > { %p1848_p12 = pnand %p1847_p11, %p2016_p5  ;;  %p1853_p2 = por %p1852_p1, %p1851_p0 }
 0x3fa   : > { %p1849_p13 = pneg %p1848_p12 }
 0x3fb   : > { %1725 = vmatpush.xpose.msk.msra.mxu3 %vm466_vm0, %v1457_v2 }
 0x3fc   : > { %p1854_p3 = pnand %p1853_p2, %p1849_p13 }
 0x3ff   : > { %1726 = vmatpush.xpose.msk.msra.mxu3 %vm466_vm0, %v1456_v7 }
 0x403   : > { %1727 = vmatpush.xpose.msk.msra.mxu3 %vm466_vm0, %v1455_v12 }
 0x407   : > { %1728 = vmatpush.xpose.msk.msra.mxu3 %vm466_vm0, %v1454_v48 }
 0x40b   : > { %1729 = vmatpush.xpose.msk.msra.mxu3 %vm466_vm0, %v1453_v16 }
 0x40f   : > { %1730 = vmatpush.xpose.msk.msra.mxu3 %vm466_vm0, %v1452_v19 }
 0x413   : > { %1731 = vmatpush.xpose.msk.msra.mxu3 %vm466_vm0, %v1451_v10 }
 0x417   : > { %1732 = vmatpush.xpose.msk.msra.mxu3 %vm466_vm0, %v1450_v20 }
 0x41b   : > { %1733 = vmatpush.xpose.msk.msra.mxu3 %vm466_vm0, %v1449_v21 }
 0x41f   : > { %1734 = vmatpush.xpose.msk.msra.mxu3 %vm466_vm0, %v1448_v17 }
 0x44b   : > { %v1373_v52 = vpop.permute.xlu2 %1372 }
 0x464   : > { %v1377_v53 = vpop.permute.xlu1 %1376 }
 0x466   : > { %v1369_v49 = vpop.permute.xlu0 %1368 }
 0x467   : > { %v1379_v28 = vsel %vm940_vm6, %v1360_v45, %v1369_v49  ;;  %v1589_v45 = vld [vmem:[%s2525_s12 + $0x50] sm:$0xff] }
 0x468   : > { %v1381_v55 = vsel %vm1380_vm5, %v1379_v28, %v1373_v52  ;;  %1600 = vmatpush.msrb.mxu0 %v1589_v45  ;;  %v1585_v49 = vld [vmem:[%s2525_s12 + $0x30] sm:$0xff]  ;;  %v1584_v52 = vld [vmem:[%s2525_s12 + $0x28] sm:$0xff] }
 0x469   : > { %v1383_v51 = vsel %vm1382_vm10, %v1381_v55, %v1377_v53  ;;  %v1583_v55 = vld [vmem:[%s2525_s12 + $0x20] sm:$0xff] }
 0x46a   : > { %1718 = vmatmul.msk.f32.vlgmr.msrb.gmra.mxu2 %vm466_vm0, %v1383_v51  ;;  %1601 = vmatpush.msrb.mxu0 %v1588_v6 }
 0x46c   : > { %1602 = vmatpush.msrb.mxu0 %v1587_v32 }
 0x46e   : > { %1603 = vmatpush.msrb.mxu0 %v1586_v50 }
 0x470   : > { %1604 = vmatpush.msrb.mxu0 %v1585_v49 }
 0x472   : > { %1605 = vmatpush.msrb.mxu0 %v1584_v52 }
 0x474   : > { %1606 = vmatpush.msrb.mxu0 %v1583_v55 }
 0x4ed   : > { %v1412_v57 = vpop.f32.mrf.mxu2 }
 0x4ee   : > { %v1413_v14 = vadd.f32 %v1790_v13, %v1412_v57  ;;  %v1582_v13 = vld [vmem:[%s2525_s12 + $0x18] sm:$0xff] }
 0x4ef   : > { %1607 = vmatpush.msrb.mxu0 %v1582_v13 }
 0x4f0   : > { %v2338_v59 = vadd.f32 %v1829_v58, %v1413_v14 }
 0x4f2   : > { %v1418_v56 = vsel %vm466_vm0, %v2338_v59, 0.0 }
 0x4f3   : > { %1419 = vadd.xlane.f32.xlu0 %v1418_v56  ;;  %v1581_v56 = vld [vmem:[%s2525_s12 + $0x10] sm:$0xff] }
 0x4f4   : > { %1608 = vmatpush.msrb.mxu0 %v1581_v56 }
 0x4f6   : > { %1609 = vmatpush.msrb.mxu0 %v1580_v60 }
 0x4f8   : > { %1610 = vmatpush.msrb.mxu0 %v1579_v63 }
 0x566   : > { %v1420_v3 = vpop.xlane.xlu0 %1419 }
 0x567   : > { %v1421_v4 = vmul.f32 %v1420_v3, %v2035_v8 }
 0x569   : > { %v1422_v9 = vsub.f32 %v2338_v59, %v1421_v4 }
 0x56b   : > { %v1423_v11 = vmul.f32 %v1422_v9, %v1422_v9 }
 0x56d   : > { %v1424_v15 = vsel %vm466_vm0, %v1423_v11, 0.0 }
 0x56e   : > { %1425 = vadd.xlane.f32.xlu2 %v1424_v15 }
 0x5e1   : > { %v1426_v18 = vpop.xlane.xlu2 %1425 }
 0x5e2   : > { %v1427_v23 = vmul.f32 %v1426_v18, %v2035_v8  ;;  %v1792_v8 = vld [vmem:[%s2522_s9] ss:$0 sm:$0xff] }
 0x5e4   : > { %v1428_v24 = vadd.f32 1e-05, %v1427_v23 }
 0x5e6   : > { %1823 = vrsqrt.f32 %v1428_v24  ;;  %vm1435_vm11 = vweird.f32 %v1428_v24 }
 0x5ec   : > { %v1824_v25 = vpop.eup %1823 }
 0x5ed   : > { %v1430_v5 = vmul.f32 %v1824_v25, %v1428_v24  ;;  %vm1436_vm6 = vweird.f32 %v1824_v25 }
 0x5ee   : > { %vm1437_vm12 = vmor %vm1435_vm11, %vm1436_vm6 }
 0x5ef   : > { %v1431_v27 = vmul.f32 %v1824_v25, %v1430_v5 }
 0x5f1   : > { %v1432_v26 = vmul.f32 0.5, %v1431_v27  ;;  %v1794_v27 = vld [vmem:[%s2526_s13] ss:$0 sm:$0xff] }
 0x5f3   : > { %v1433_v29 = vsub.f32 1.5, %v1432_v26 }
 0x5f5   : > { %v1434_v30 = vmul.f32 %v1824_v25, %v1433_v29 }
 0x5f7   : > { %v1438_v33 = vsel %vm1437_vm12, %v1824_v25, %v1434_v30 }
 0x5f8   : > { %v1439_v34 = vmul.f32 %v1438_v33, %v1422_v9 }
 0x5fa   : > { %v1443_v35 = vmul.f32 %v1791_v31, %v1439_v34 }
 0x5fc   : > { %v1447_v22 = vadd.f32 %v1792_v8, %v1443_v35 }
 0x5fe   : > { %1735 = vmatmul.msk.f32.vlgmr.msra.gmra.mxu3 %vm466_vm0, %v1447_v22 }
 0x681   : > { %v1536_v40 = vpop.f32.mrf.mxu3 }
 0x682   : > { %v2429_v54 = vadd.f32 %v1793_v38, %v1536_v40 }
 0x684   : > { %v2435_v42 = vmul.f32 0.70710677, %v2429_v54  ;;  %v1539_v24 = vmul.f32 0.5, %v2429_v54 }
 0x686   : > { %v1541_v44 = vand.u32 2147483647, %v2435_v42  ;;  %vm1574_vm2 = vcmp.ge.f32.partialorder %v2435_v42, 0.0 }
 0x688   : > { %v1542_v46 = vmul.f32 0.3275911, %v1541_v44  ;;  %v1568_v2 = vsub.f32 0.0, %v1541_v44 }
 0x68a   : > { %v1543_v47 = vadd.f32 1.0, %v1542_v46  ;;  %v1569_v7 = vmul.f32 %v1568_v2, %v1541_v44 }
 0x68c   : > { %1825 = vrcp.f32 %v1543_v47  ;;  %v1555_v57 = vand.u32 2147483648, %v1543_v47  ;;  %v1553_v58 = vand.u32 2147483647, %v1543_v47  ;;  %vm1549_vm14 = vweird.f32 %v1543_v47 }
 0x68d   : > { %v1570_v12 = vmul.f32 1.442695, %v1569_v7 }
 0x68e   : > { %v1556_v61 = vor.u32 1.1754944e-38, %v1555_v57  ;;  %vm1554_vm1 = vcmp.eq.f32.partialorder %v1553_v58, 8.507059e+37 }
 0x68f   : > { %1827 = vpow2.f32 %v1570_v12 }
 0x692   : > { %v1826_v28 = vpop.eup %1825 }
 0x693   : > { %v1545_v53 = vmul.f32 %v1826_v28, %v1543_v47  ;;  %vm1550_vm13 = vweird.f32 %v1826_v28 }
 0x694   : > { %vm1551_vm15 = vmor %vm1549_vm14, %vm1550_vm13 }
 0x695   : > { %v1546_v51 = vsub.f32 1.0, %v1545_v53  ;;  %v1828_v20 = vpop.eup %1827 }
 0x697   : > { %v1547_v14 = vmul.f32 %v1826_v28, %v1546_v51 }
 0x699   : > { %v1548_v62 = vadd.f32 %v1826_v28, %v1547_v14 }
 0x69b   : > { %v1552_v0 = vsel %vm1551_vm15, %v1826_v28, %v1548_v62 }
 0x69c   : > { %v1557_v1 = vsel %vm1554_vm1, %v1556_v61, %v1552_v0 }
 0x69d   : > { %v1559_v3 = vmul.f32 1.0614054, %v1557_v1 }
 0x69f   : > { %v1560_v4 = vadd.f32 -1.4531521, %v1559_v3 }
 0x6a1   : > { %v1561_v9 = vmul.f32 %v1560_v4, %v1557_v1 }
 0x6a3   : > { %v1562_v11 = vadd.f32 1.4214138, %v1561_v9 }
 0x6a5   : > { %v1563_v15 = vmul.f32 %v1562_v11, %v1557_v1 }
 0x6a7   : > { %v1564_v48 = vadd.f32 -0.28449672, %v1563_v15 }
 0x6a9   : > { %v1565_v16 = vmul.f32 %v1564_v48, %v1557_v1 }
 0x6ab   : > { %v1566_v19 = vadd.f32 0.2548296, %v1565_v16 }
 0x6ad   : > { %v1567_v10 = vmul.f32 %v1566_v19, %v1557_v1 }
 0x6af   : > { %v1572_v21 = vmul.f32 %v1828_v20, %v1567_v10 }
 0x6b1   : > { %v1573_v17 = vsub.f32 1.0, %v1572_v21 }
 0x6b3   : > { %v1575_v18 = vsub.f32 0.0, %v1573_v17 }
 0x6b5   : > { %v1576_v23 = vsel %vm1574_vm2, %v1573_v17, %v1575_v18 }
 0x6b6   : > { %v1577_v25 = vadd.f32 1.0, %v1576_v23 }
 0x6b8   : > { %v1578_v5 = vmul.f32 %v1577_v25, %v1539_v24 }
 0x6ba   : > { %1611 = vmatmul.f32.vlgmr.msrb.gmra.mxu0 %v1578_v5 }
 0x737   : > { %v1612_v26 = vpop.f32.mrf.mxu0 }
 0x738   : > { %v1615_v29 = vadd.f32 %v1612_v26, %v2338_v59 }
 0x73a   : > { %v1620_v30 = vadd.f32 %v1794_v27, %v1615_v29 }
 0x73c   : > { %1621 = vst.msk [vmem:[%s458_s28] sm:$0xff] %vm466_vm0, %v1620_v30 }
 0x73d   : > { %1857 = shalt.err (!%p1854_p3)
}
 0x73e   : > { %1740 = dma.vmem_to_hbm [thread:$0]  (%p2016_p5), %s1636_s0, 128, %s1638_s22, %s1623_s17  }
 0x73f PF: > { %p1746_p4 = scmp.ge.s32.totalorder %s1892_s16, 2  ;;  %s1649_s15 = sand.u32 1, %s1880_s29  }
 0x740   : > { %s1650_s27 = scalar_lea.sflag [#allocation3], %s1649_s15 }
 0x741   : > { %p1743_p7 = pnand %p1746_p4, %p2020_p6 }
 0x743   : > { %p1744_p8 = pneg %p1743_p7 }
 0x745   : > { %1875 = dma.done.wait (%p1744_p8), %s1650_s27, 128  }
 0x746   : > { %1877 = vsyncadd (%p1744_p8), %s1650_s27, 4294967168  ;;  %s2542_s16 = sld [smem:[#allocation6_spill]]  ;;  %s2545_s29 = smov %s1884_s30 }
 0x747   : > { %s2543_s1 = sld [smem:[#allocation5_spill]] }
 0x748   : > { %s2544_s15 = sld [smem:[#allocation7_spill]] }
 0x74c   : > { %p24_p9 = scmp.ge.s32.totalorder %s2542_s16, 4  }
 0x74d   : > { %s2546_s30 = smov %s2543_s1 }
 0x74e   :  { %26 = sbr.rel (!%p24_p9) target bundleno = 6 (0x6), region = 111 }
 0x753   :  { %1656 = vsyncpa [#allocation3], 1 }
 0x754   :  { %1658 = vsyncpa [#allocation3 + $0x1], 1 }

</bundles_post_ra>
